<compile_context>
chip_gen: v5e
topology: v5e:2x2
jax: 0.10.0
libtpu: 0.0.40
codegen_flags: <defaults>
</compile_context>

<pallas_src>
import math

import jax
import jax.numpy as jnp
from jax.experimental import pallas as pl
from jax.experimental.pallas import tpu as pltpu


def _round_up(x: int, m: int) -> int:
    return ((x + m - 1) // m) * m


def _cdiv(a: int, b: int) -> int:
    return (a + b - 1) // b


def _choose_tiling(batch: int, *, max_tile: int = 1024):
    """Pick (tile_b, padded_batch): tight division, >=2 grid steps when possible."""
    b16 = _round_up(max(batch, 8), 16)
    if b16 <= 32:
        return b16, b16  # too small to split; single grid step
    # >=2 steps so the x/out DMAs overlap compute and v7x can shard the grid
    # across both TensorCores; tiles approach max_tile for large batches.
    n_steps = max(2, _cdiv(b16, max_tile))
    tile_b = _round_up(_cdiv(b16, n_steps), 16)
    return tile_b, tile_b * n_steps


def _mlp_kernel(x_ref, w1_ref, b1_ref, w2_ref, b2_ref, w3_ref, b3_ref, o_ref):
    # Three MXU matmuls + two ReLUs, all resident in VMEM for this batch tile.
    # x arrives f32 and is cast to the compute dtype here (no extra HBM pass);
    # accumulation / bias / ReLU stay f32, activations in compute dtype.
    cdt = w1_ref.dtype
    x = x_ref[...].astype(cdt)
    h1 = jnp.dot(x, w1_ref[...], preferred_element_type=jnp.float32) + b1_ref[...]
    h1 = jnp.maximum(h1, 0.0).astype(cdt)
    h2 = jnp.dot(h1, w2_ref[...], preferred_element_type=jnp.float32) + b2_ref[...]
    h2 = jnp.maximum(h2, 0.0).astype(cdt)
    out = jnp.dot(h2, w3_ref[...], preferred_element_type=jnp.float32) + b3_ref[...]
    o_ref[...] = out.astype(o_ref.dtype)


def prepare_params(params, compute_dtype=jnp.bfloat16):
    """Hoisted pad+cast of the weights (do once, reuse across forward calls).

    w1: (d_in, h_p)  -- K side left at d_in (x stays unpadded), N padded to 128.
    w2: (h_p, h_p)
    w3: (h_p, d_out) -- N side left at d_out (output stays unpadded).
    Biases stay f32.
    """
    w1, b1 = params["w1"], params["b1"]
    w2, b2 = params["w2"], params["b2"]
    w3, b3 = params["w3"], params["b3"]
    d_in, h_dim = w1.shape
    d_out = w3.shape[1]
    h_p = _round_up(h_dim, 128)
    ph = h_p - h_dim
    f32 = jnp.float32
    return {
        "w1": jnp.pad(w1, ((0, 0), (0, ph))).astype(compute_dtype),
        "b1": jnp.pad(b1, ((0, 0), (0, ph))).astype(f32),
        "w2": jnp.pad(w2, ((0, ph), (0, ph))).astype(compute_dtype),
        "b2": jnp.pad(b2, ((0, 0), (0, ph))).astype(f32),
        "w3": jnp.pad(w3, ((0, ph), (0, 0))).astype(compute_dtype),
        "b3": b3.astype(f32),
        "dims": (d_in, h_dim, d_out, h_p),
        "compute_dtype": compute_dtype,
    }


def feature_extractor_forward(x, prepared, *, tile_b=None):
    """3-layer MLP forward (Linear-ReLU-Linear-ReLU-Linear) via Pallas.

    x: (B, d_in) float32; prepared: output of prepare_params().
    """
    d_in, h_dim, d_out, h_p = prepared["dims"]
    cdt = prepared["compute_dtype"]
    w1p, b1p = prepared["w1"], prepared["b1"]
    w2p, b2p = prepared["w2"], prepared["b2"]
    w3p, b3p = prepared["w3"], prepared["b3"]

    B = x.shape[0]
    assert x.shape[1] == d_in, "input feature dim mismatch"

    if tile_b is None:
        tile_b, b_pad = _choose_tiling(B)
    else:
        tile_b = _round_up(max(tile_b, 8), 16)
        b_pad = _round_up(B, tile_b)

    xp = x.astype(jnp.float32)
    if b_pad != B:
        xp = jnp.pad(xp, ((0, b_pad - B), (0, 0)))  # rows only; columns untouched

    grid = (b_pad // tile_b,)

    # VMEM budget: double-buffered f32 x/out tiles, (conservatively double-
    # buffered) weights+biases, f32 intermediates, plus slack.  Cap at 56 MiB
    # to keep headroom under v7x's 64 MiB physical VMEM per TensorCore.
    isz = jnp.dtype(cdt).itemsize
    w_elems = d_in * h_p + h_p * h_p + h_p * d_out
    b_elems = 2 * h_p + d_out
    vmem_bytes = (
        2 * tile_b * d_in * 4
        + 2 * tile_b * d_out * 4
        + 2 * w_elems * isz
        + 2 * b_elems * 4
        + 3 * tile_b * h_p * 4
        + (2 << 20)
    )
    vmem_limit = int(min(max(vmem_bytes, 4 << 20), 56 << 20))

    # Advisory cost estimate (logical, unpadded dims).
    cost = pl.CostEstimate(
        flops=int(2 * B * (d_in * h_dim + h_dim * h_dim + h_dim * d_out)),
        transcendentals=0,
        bytes_accessed=int(B * d_in * 4 + w_elems * isz + b_elems * 4 + B * d_out * 4),
    )

    def build(single_buffer_weights):
        if single_buffer_weights:
            # Grid-invariant operands: DMA once, keep a single VMEM buffer.
            wspec = lambda a: pl.BlockSpec(
                a.shape, lambda i: (0, 0), pipeline_mode=pl.Buffered(1)
            )
        else:
            wspec = lambda a: pl.BlockSpec(a.shape, lambda i: (0, 0))
        return pl.pallas_call(
            _mlp_kernel,
            out_shape=jax.ShapeDtypeStruct((b_pad, d_out), jnp.float32),
            grid_spec=pltpu.PrefetchScalarGridSpec(
                num_scalar_prefetch=0,
                grid=grid,
                in_specs=[
                    # x tile: full (unpadded) last dim, batch-tiled first dim.
                    pl.BlockSpec((tile_b, d_in), lambda i: (i, 0)),
                    wspec(w1p), wspec(b1p),
                    wspec(w2p), wspec(b2p),
                    wspec(w3p), wspec(b3p),
                ],
                # Output tile: unpadded d_out last dim -> no padded writeback.
                out_specs=pl.BlockSpec((tile_b, d_out), lambda i: (i, 0)),
            ),
            compiler_params=pltpu.CompilerParams(
                dimension_semantics=("parallel",),
                vmem_limit_bytes=vmem_limit,
            ),
            cost_estimate=cost,
        )

    args = (xp, w1p, b1p, w2p, b2p, w3p, b3p)
    try:
        out_padded = build(True)(*args)
    except Exception:
        # Older JAX without single-buffer pipeline_mode support: default buffering.
        out_padded = build(False)(*args)

    return out_padded if b_pad == B else out_padded[:B]


def init_params(key, input_dim, hidden_dim, output_dim):
    """Deterministic synthetic parameters (same shapes as the nn.Sequential)."""
    ks = jax.random.split(key, 6)

    def lin(kw, kb, fan_in, fan_out):
        lim = 1.0 / math.sqrt(float(fan_in))
        w = jax.random.uniform(kw, (fan_in, fan_out), jnp.float32, -lim, lim)
        b = jax.random.uniform(kb, (1, fan_out), jnp.float32, -lim, lim)
        return w, b

    w1, b1 = lin(ks[0], ks[1], input_dim, hidden_dim)
    w2, b2 = lin(ks[2], ks[3], hidden_dim, hidden_dim)
    w3, b3 = lin(ks[4], ks[5], hidden_dim, output_dim)
    return {"w1": w1, "b1": b1, "w2": w2, "b2": b2, "w3": w3, "b3": b3}


def _reference_forward(x, p):
    h1 = jnp.maximum(x @ p["w1"] + p["b1"], 0.0)
    h2 = jnp.maximum(h1 @ p["w2"] + p["b2"], 0.0)
    return h2 @ p["w3"] + p["b3"]


if __name__ == "__main__":
    key = jax.random.PRNGKey(0)
    k_x, k_p = jax.random.split(key)

    # batch=384 -> tile_b=192, grid of 2 "parallel" steps, zero padded rows.
    batch, input_dim, hidden_dim, output_dim = 384, 32, 64, 16
    x = jax.random.normal(k_x, (batch, input_dim), dtype=jnp.float32)
    params = init_params(k_p, input_dim, hidden_dim, output_dim)

    ref = _reference_forward(x, params)

    # f32 compute path: exact semantics check (prepared params reused below).
    prepped_f32 = prepare_params(params, compute_dtype=jnp.float32)
    out_f32 = jax.block_until_ready(feature_extractor_forward(x, prepped_f32))
    assert out_f32.shape == (batch, output_dim)
    assert jnp.allclose(out_f32, ref, atol=1e-5, rtol=1e-5), "f32 path mismatch vs reference"

    # Default bf16 compute path (halves weight/activation HBM+VMEM traffic).
    prepped_bf16 = prepare_params(params)  # compute_dtype=bf16
    out_bf16 = jax.block_until_ready(feature_extractor_forward(x, prepped_bf16))
    assert out_bf16.shape == (batch, output_dim)
    assert jnp.allclose(out_bf16, ref, atol=1e-1, rtol=1e-1), "bf16 path mismatch vs reference"

    # Ragged batch (exercises row zero-padding + reuse of prepared params).
    out_small = jax.block_until_ready(feature_extractor_forward(x[:100], prepped_f32))
    assert out_small.shape == (100, output_dim)
    assert jnp.allclose(out_small, ref[:100], atol=1e-5, rtol=1e-5), "ragged-batch mismatch"

    print("KERNEL_OK")
</pallas_src>

<mosaic_0001>
module attributes {stable_mosaic.version = 11 : i64} {
  func.func @_mlp_kernel(%arg0: i32, %arg1: memref<192x32xf32, #tpu.memory_space<vmem>>, %arg2: memref<32x128xf32, #tpu.memory_space<vmem>>, %arg3: memref<1x128xf32, #tpu.memory_space<vmem>>, %arg4: memref<128x128xf32, #tpu.memory_space<vmem>>, %arg5: memref<1x128xf32, #tpu.memory_space<vmem>>, %arg6: memref<128x16xf32, #tpu.memory_space<vmem>>, %arg7: memref<1x16xf32, #tpu.memory_space<vmem>>, %arg8: memref<192x16xf32, #tpu.memory_space<vmem>>) attributes {dimension_semantics = [#tpu.dimension_semantics<parallel>], iteration_bounds = array<i64: 2>, scalar_prefetch = 0 : i64, scratch_operands = 0 : i64, tpu.core_type = #tpu.core_type<tc>, window_params = [{transform_indices = @transform_0, window_bounds = array<i64: 192, 32>}, {pipeline_mode = #tpu.pipeline_mode<synchronous>, transform_indices = @transform_1, window_bounds = array<i64: 32, 128>}, {pipeline_mode = #tpu.pipeline_mode<synchronous>, transform_indices = @transform_2, window_bounds = array<i64: 1, 128>}, {pipeline_mode = #tpu.pipeline_mode<synchronous>, transform_indices = @transform_3, window_bounds = array<i64: 128, 128>}, {pipeline_mode = #tpu.pipeline_mode<synchronous>, transform_indices = @transform_4, window_bounds = array<i64: 1, 128>}, {pipeline_mode = #tpu.pipeline_mode<synchronous>, transform_indices = @transform_5, window_bounds = array<i64: 128, 16>}, {pipeline_mode = #tpu.pipeline_mode<synchronous>, transform_indices = @transform_6, window_bounds = array<i64: 1, 16>}, {transform_indices = @transform_7, window_bounds = array<i64: 192, 16>}]} {
    %c0 = arith.constant 0 : index
    %c0_0 = arith.constant 0 : index
    %0 = vector.load %arg1[%c0, %c0_0] : memref<192x32xf32, #tpu.memory_space<vmem>>, vector<192x32xf32>
    %c0_1 = arith.constant 0 : index
    %c0_2 = arith.constant 0 : index
    %1 = vector.load %arg2[%c0_1, %c0_2] : memref<32x128xf32, #tpu.memory_space<vmem>>, vector<32x128xf32>
    %cst = arith.constant dense<0.000000e+00> : vector<192x128xf32>
    %2 = tpu.matmul %0, %1, %cst {dimension_numbers = #tpu.dot_dimension_numbers<[1], [0], [0], [1], [0, 0, 1, 1], [], []>} : vector<192x32xf32>, vector<32x128xf32>, vector<192x128xf32> -> vector<192x128xf32>
    %c0_3 = arith.constant 0 : index
    %c0_4 = arith.constant 0 : index
    %3 = vector.load %arg3[%c0_3, %c0_4] : memref<1x128xf32, #tpu.memory_space<vmem>>, vector<1x128xf32>
    %4 = vector.broadcast %3 : vector<1x128xf32> to vector<192x128xf32>
    %5 = arith.addf %2, %4 : vector<192x128xf32>
    %cst_5 = arith.constant 0.000000e+00 : f32
    %6 = vector.broadcast %cst_5 : f32 to vector<192x128xf32>
    %7 = arith.maximumf %5, %6 : vector<192x128xf32>
    %c0_6 = arith.constant 0 : index
    %c0_7 = arith.constant 0 : index
    %8 = vector.load %arg4[%c0_6, %c0_7] : memref<128x128xf32, #tpu.memory_space<vmem>>, vector<128x128xf32>
    %cst_8 = arith.constant dense<0.000000e+00> : vector<192x128xf32>
    %9 = tpu.matmul %7, %8, %cst_8 {dimension_numbers = #tpu.dot_dimension_numbers<[1], [0], [0], [1], [0, 0, 1, 1], [], []>} : vector<192x128xf32>, vector<128x128xf32>, vector<192x128xf32> -> vector<192x128xf32>
    %c0_9 = arith.constant 0 : index
    %c0_10 = arith.constant 0 : index
    %10 = vector.load %arg5[%c0_9, %c0_10] : memref<1x128xf32, #tpu.memory_space<vmem>>, vector<1x128xf32>
    %11 = vector.broadcast %10 : vector<1x128xf32> to vector<192x128xf32>
    %12 = arith.addf %9, %11 : vector<192x128xf32>
    %cst_11 = arith.constant 0.000000e+00 : f32
    %13 = vector.broadcast %cst_11 : f32 to vector<192x128xf32>
    %14 = arith.maximumf %12, %13 : vector<192x128xf32>
    %c0_12 = arith.constant 0 : index
    %c0_13 = arith.constant 0 : index
    %15 = vector.load %arg6[%c0_12, %c0_13] : memref<128x16xf32, #tpu.memory_space<vmem>>, vector<128x16xf32>
    %cst_14 = arith.constant dense<0.000000e+00> : vector<192x16xf32>
    %16 = tpu.matmul %14, %15, %cst_14 {dimension_numbers = #tpu.dot_dimension_numbers<[1], [0], [0], [1], [0, 0, 1, 1], [], []>} : vector<192x128xf32>, vector<128x16xf32>, vector<192x16xf32> -> vector<192x16xf32>
    %c0_15 = arith.constant 0 : index
    %c0_16 = arith.constant 0 : index
    %17 = vector.load %arg7[%c0_15, %c0_16] : memref<1x16xf32, #tpu.memory_space<vmem>>, vector<1x16xf32>
    %18 = vector.broadcast %17 : vector<1x16xf32> to vector<192x16xf32>
    %19 = arith.addf %16, %18 : vector<192x16xf32>
    %c0_17 = arith.constant 0 : index
    %c0_18 = arith.constant 0 : index
    %20 = vector.load %arg8[%c0_17, %c0_18] : memref<192x16xf32, #tpu.memory_space<vmem>>, vector<192x16xf32>
    tpu.vector_store %arg8[%c0_17, %c0_18], %19 {strides = array<i32>} : memref<192x16xf32, #tpu.memory_space<vmem>>, vector<192x16xf32>,
    return
  }
  func.func @transform_0(%arg0: i32) -> (i32, i32) {
    %c0_i32 = arith.constant 0 : i32
    %c0_i32_0 = arith.constant 0 : i32
    return %arg0, %c0_i32 : i32, i32
  }
  func.func @transform_1(%arg0: i32) -> (i32, i32) {
    %c0_i32 = arith.constant 0 : i32
    %c0_i32_0 = arith.constant 0 : i32
    %c0_i32_1 = arith.constant 0 : i32
    return %c0_i32, %c0_i32_0 : i32, i32
  }
  func.func @transform_2(%arg0: i32) -> (i32, i32) {
    %c0_i32 = arith.constant 0 : i32
    %c0_i32_0 = arith.constant 0 : i32
    %c0_i32_1 = arith.constant 0 : i32
    return %c0_i32, %c0_i32_0 : i32, i32
  }
  func.func @transform_3(%arg0: i32) -> (i32, i32) {
    %c0_i32 = arith.constant 0 : i32
    %c0_i32_0 = arith.constant 0 : i32
    %c0_i32_1 = arith.constant 0 : i32
    return %c0_i32, %c0_i32_0 : i32, i32
  }
  func.func @transform_4(%arg0: i32) -> (i32, i32) {
    %c0_i32 = arith.constant 0 : i32
    %c0_i32_0 = arith.constant 0 : i32
    %c0_i32_1 = arith.constant 0 : i32
    return %c0_i32, %c0_i32_0 : i32, i32
  }
  func.func @transform_5(%arg0: i32) -> (i32, i32) {
    %c0_i32 = arith.constant 0 : i32
    %c0_i32_0 = arith.constant 0 : i32
    %c0_i32_1 = arith.constant 0 : i32
    return %c0_i32, %c0_i32_0 : i32, i32
  }
  func.func @transform_6(%arg0: i32) -> (i32, i32) {
    %c0_i32 = arith.constant 0 : i32
    %c0_i32_0 = arith.constant 0 : i32
    %c0_i32_1 = arith.constant 0 : i32
    return %c0_i32, %c0_i32_0 : i32, i32
  }
  func.func @transform_7(%arg0: i32) -> (i32, i32) {
    %c0_i32 = arith.constant 0 : i32
    %c0_i32_0 = arith.constant 0 : i32
    return %arg0, %c0_i32 : i32, i32
  }
}

module attributes {stable_mosaic.version = 11 : i64} {
  func.func @_mlp_kernel(%arg0: i32, %arg1: memref<192x32xf32, #tpu.memory_space<vmem>>, %arg2: memref<32x128xf32, #tpu.memory_space<vmem>>, %arg3: memref<1x128xf32, #tpu.memory_space<vmem>>, %arg4: memref<128x128xf32, #tpu.memory_space<vmem>>, %arg5: memref<1x128xf32, #tpu.memory_space<vmem>>, %arg6: memref<128x16xf32, #tpu.memory_space<vmem>>, %arg7: memref<1x16xf32, #tpu.memory_space<vmem>>, %arg8: memref<192x16xf32, #tpu.memory_space<vmem>>) attributes {dimension_semantics = [#tpu.dimension_semantics<parallel>], iteration_bounds = array<i64: 2>, scalar_prefetch = 0 : i64, scratch_operands = 0 : i64, tpu.core_type = #tpu.core_type<tc>, window_params = [{transform_indices = @transform_0, window_bounds = array<i64: 192, 32>}, {pipeline_mode = #tpu.pipeline_mode<synchronous>, transform_indices = @transform_1, window_bounds = array<i64: 32, 128>}, {pipeline_mode = #tpu.pipeline_mode<synchronous>, transform_indices = @transform_2, window_bounds = array<i64: 1, 128>}, {pipeline_mode = #tpu.pipeline_mode<synchronous>, transform_indices = @transform_3, window_bounds = array<i64: 128, 128>}, {pipeline_mode = #tpu.pipeline_mode<synchronous>, transform_indices = @transform_4, window_bounds = array<i64: 1, 128>}, {pipeline_mode = #tpu.pipeline_mode<synchronous>, transform_indices = @transform_5, window_bounds = array<i64: 128, 16>}, {pipeline_mode = #tpu.pipeline_mode<synchronous>, transform_indices = @transform_6, window_bounds = array<i64: 1, 16>}, {transform_indices = @transform_7, window_bounds = array<i64: 192, 16>}]} {
    %c0 = arith.constant 0 : index
    %c0_0 = arith.constant 0 : index
    %0 = vector.load %arg1[%c0, %c0_0] : memref<192x32xf32, #tpu.memory_space<vmem>>, vector<192x32xf32>
    %c0_1 = arith.constant 0 : index
    %c0_2 = arith.constant 0 : index
    %1 = vector.load %arg2[%c0_1, %c0_2] : memref<32x128xf32, #tpu.memory_space<vmem>>, vector<32x128xf32>
    %cst = arith.constant dense<0.000000e+00> : vector<192x128xf32>
    %2 = tpu.matmul %0, %1, %cst {dimension_numbers = #tpu.dot_dimension_numbers<[1], [0], [0], [1], [0, 0, 1, 1], [], []>} : vector<192x32xf32>, vector<32x128xf32>, vector<192x128xf32> -> vector<192x128xf32>
    %c0_3 = arith.constant 0 : index
    %c0_4 = arith.constant 0 : index
    %3 = vector.load %arg3[%c0_3, %c0_4] : memref<1x128xf32, #tpu.memory_space<vmem>>, vector<1x128xf32>
    %4 = vector.broadcast %3 : vector<1x128xf32> to vector<192x128xf32>
    %5 = arith.addf %2, %4 : vector<192x128xf32>
    %cst_5 = arith.constant 0.000000e+00 : f32
    %6 = vector.broadcast %cst_5 : f32 to vector<192x128xf32>
    %7 = arith.maximumf %5, %6 : vector<192x128xf32>
    %c0_6 = arith.constant 0 : index
    %c0_7 = arith.constant 0 : index
    %8 = vector.load %arg4[%c0_6, %c0_7] : memref<128x128xf32, #tpu.memory_space<vmem>>, vector<128x128xf32>
    %cst_8 = arith.constant dense<0.000000e+00> : vector<192x128xf32>
    %9 = tpu.matmul %7, %8, %cst_8 {dimension_numbers = #tpu.dot_dimension_numbers<[1], [0], [0], [1], [0, 0, 1, 1], [], []>} : vector<192x128xf32>, vector<128x128xf32>, vector<192x128xf32> -> vector<192x128xf32>
    %c0_9 = arith.constant 0 : index
    %c0_10 = arith.constant 0 : index
    %10 = vector.load %arg5[%c0_9, %c0_10] : memref<1x128xf32, #tpu.memory_space<vmem>>, vector<1x128xf32>
    %11 = vector.broadcast %10 : vector<1x128xf32> to vector<192x128xf32>
    %12 = arith.addf %9, %11 : vector<192x128xf32>
    %cst_11 = arith.constant 0.000000e+00 : f32
    %13 = vector.broadcast %cst_11 : f32 to vector<192x128xf32>
    %14 = arith.maximumf %12, %13 : vector<192x128xf32>
    %c0_12 = arith.constant 0 : index
    %c0_13 = arith.constant 0 : index
    %15 = vector.load %arg6[%c0_12, %c0_13] : memref<128x16xf32, #tpu.memory_space<vmem>>, vector<128x16xf32>
    %cst_14 = arith.constant dense<0.000000e+00> : vector<192x16xf32>
    %16 = tpu.matmul %14, %15, %cst_14 {dimension_numbers = #tpu.dot_dimension_numbers<[1], [0], [0], [1], [0, 0, 1, 1], [], []>} : vector<192x128xf32>, vector<128x16xf32>, vector<192x16xf32> -> vector<192x16xf32>
    %c0_15 = arith.constant 0 : index
    %c0_16 = arith.constant 0 : index
    %17 = vector.load %arg7[%c0_15, %c0_16] : memref<1x16xf32, #tpu.memory_space<vmem>>, vector<1x16xf32>
    %18 = vector.broadcast %17 : vector<1x16xf32> to vector<192x16xf32>
    %19 = arith.addf %16, %18 : vector<192x16xf32>
    %c0_17 = arith.constant 0 : index
    %c0_18 = arith.constant 0 : index
    %20 = vector.load %arg8[%c0_17, %c0_18] : memref<192x16xf32, #tpu.memory_space<vmem>>, vector<192x16xf32>
    tpu.vector_store %arg8[%c0_17, %c0_18], %19 {strides = array<i32>} : memref<192x16xf32, #tpu.memory_space<vmem>>, vector<192x16xf32>,
    return
  }
  func.func @transform_0(%arg0: i32) -> (i32, i32) {
    %c0_i32 = arith.constant 0 : i32
    %c0_i32_0 = arith.constant 0 : i32
    return %arg0, %c0_i32 : i32, i32
  }
  func.func @transform_1(%arg0: i32) -> (i32, i32) {
    %c0_i32 = arith.constant 0 : i32
    %c0_i32_0 = arith.constant 0 : i32
    %c0_i32_1 = arith.constant 0 : i32
    return %c0_i32, %c0_i32_0 : i32, i32
  }
  func.func @transform_2(%arg0: i32) -> (i32, i32) {
    %c0_i32 = arith.constant 0 : i32
    %c0_i32_0 = arith.constant 0 : i32
    %c0_i32_1 = arith.constant 0 : i32
    return %c0_i32, %c0_i32_0 : i32, i32
  }
  func.func @transform_3(%arg0: i32) -> (i32, i32) {
    %c0_i32 = arith.constant 0 : i32
    %c0_i32_0 = arith.constant 0 : i32
    %c0_i32_1 = arith.constant 0 : i32
    return %c0_i32, %c0_i32_0 : i32, i32
  }
  func.func @transform_4(%arg0: i32) -> (i32, i32) {
    %c0_i32 = arith.constant 0 : i32
    %c0_i32_0 = arith.constant 0 : i32
    %c0_i32_1 = arith.constant 0 : i32
    return %c0_i32, %c0_i32_0 : i32, i32
  }
  func.func @transform_5(%arg0: i32) -> (i32, i32) {
    %c0_i32 = arith.constant 0 : i32
    %c0_i32_0 = arith.constant 0 : i32
    %c0_i32_1 = arith.constant 0 : i32
    return %c0_i32, %c0_i32_0 : i32, i32
  }
  func.func @transform_6(%arg0: i32) -> (i32, i32) {
    %c0_i32 = arith.constant 0 : i32
    %c0_i32_0 = arith.constant 0 : i32
    %c0_i32_1 = arith.constant 0 : i32
    return %c0_i32, %c0_i32_0 : i32, i32
  }
  func.func @transform_7(%arg0: i32) -> (i32, i32) {
    %c0_i32 = arith.constant 0 : i32
    %c0_i32_0 = arith.constant 0 : i32
    return %arg0, %c0_i32 : i32, i32
  }
}

</mosaic_0001>

<bundles_post_ra>
// kernel: tpu_custom_call.1
= control target key start
LH: loop header
LB: loop body
LE: loop exit
PB: predicated region body
PF: predicated region fallthrough
CT: control target
= control target key end

     0   :  { %s951_s24 = smov 0   ;;  %s1270_s0 = inlined_call_operand.vmem [shape: f32[384,32], index: 0, kind: input, shape index: {}]   ;;  %s1271_s1 = inlined_call_operand.vmem [shape: f32[32,128], index: 1, kind: input, shape index: {}]   ;;  %s1272_s2 = inlined_call_operand.vmem [shape: f32[1,128], index: 2, kind: input, shape index: {}]   ;;  %s1273_s3 = inlined_call_operand.vmem [shape: f32[128,128], index: 3, kind: input, shape index: {}]   ;;  %s1274_s4 = inlined_call_operand.vmem [shape: f32[1,128], index: 4, kind: input, shape index: {}]   ;;  %s1275_s5 = inlined_call_operand.vmem [shape: f32[128,16], index: 5, kind: input, shape index: {}]   ;;  %s1276_s6 = inlined_call_operand.vmem [shape: f32[1,16], index: 6, kind: input, shape index: {}]   ;;  %s1277_s7 = inlined_call_operand.vmem [shape: f32[384,16], index: 7, kind: output, shape index: {}]  }
   0x1 LB: > { %s823_s25 = sadd.s32 4294967295, %s909_s24   ;;  %p827_p0 = scmp.ge.s32.totalorder %s909_s24, 1  ;;  %s909_s24 = sphi %s951_s24, %s17_s24  }
   0x2   : > { %p238_p1 = scmp.lt.s32.totalorder %s909_s24, 3 }
   0x4   : > { %p239_p2 = pnand %p827_p0, %p238_p1 }
   0x5   : > { %s270_s30 = smul.u32 (!%p239_p2), 24, %s823_s25 }
   0x6   : > { %242 = sbr.rel (%p239_p2) target bundleno = 604 (0x25c), region = 48 }
   0x7   : > { %p271_p3 = scmp.lt.s32.totalorder (!%p239_p2), %s270_s30, 47 }
   0xb   : > { %v309_v0 = vld [vmem:[%s1271_s1 + $0x18] sm:$0xff]  ;;  %v308_v1 = vld [vmem:[%s1271_s1 + $0x10] sm:$0xff]  ;;  %v307_v2 = vld [vmem:[%s1271_s1 + $0x8] sm:$0xff]  ;;  %s1279_s30 = smov (!%p271_p3, %s270_s30), 47  ;;  %vm314_vm0 = vcmask 261120   ;;  %vm742_vm1 = vcmask 130048  }
   0xc   : > { %399 = vmatpush.msra.mxu0 %v309_v0  ;;  %856 = vmatpush.msra.mxu3 %v309_v0  ;;  %v306_v3 = vld [vmem:[%s1271_s1] sm:$0xff]  ;;  %s828_s12 = sshll.u32 %s1279_s30, 3  ;;  %v515_v13 = vld [vmem:[%s1273_s3 + $0x78] sm:$0xff]  ;;  %v514_v14 = vld [vmem:[%s1273_s3 + $0x70] sm:$0xff] }
   0xd   : > { %s979_s15 = scalar_lea.vmem %s1270_s0, %s828_s12  ;;  %520 = vmatpush.msra.mxu1 %v515_v13  ;;  %v513_v15 = vld [vmem:[%s1273_s3 + $0x68] sm:$0xff]  ;;  %v512_v17 = vld [vmem:[%s1273_s3 + $0x60] sm:$0xff]  ;;  %v511_v18 = vld [vmem:[%s1273_s3 + $0x58] sm:$0xff]  ;;  %s1186_s8 = scalar_lea.vmem %s1277_s7, %s828_s12 }
   0xe   : > { %400 = vmatpush.msra.mxu0 %v308_v1  ;;  %857 = vmatpush.msra.mxu3 %v308_v1  ;;  %v282_v4 = vld [vmem:[%s979_s15] sm:$0xff]  ;;  %v283_v5 = vld [vmem:[%s979_s15 + $0x8] sm:$0xff]  ;;  %v284_v6 = vld [vmem:[%s979_s15 + $0x10] sm:$0xff] }
   0xf   : > { %v285_v7 = vld [vmem:[%s979_s15 + $0x18] sm:$0xff]  ;;  %v286_v8 = vld [vmem:[%s979_s15 + $0x20] sm:$0xff]  ;;  %v287_v9 = vld [vmem:[%s979_s15 + $0x28] sm:$0xff]  ;;  %521 = vmatpush.msra.mxu1 %v514_v14 }
  0x10   : > { %401 = vmatpush.msra.mxu0 %v307_v2  ;;  %858 = vmatpush.msra.mxu3 %v307_v2  ;;  %v288_v10 = vld [vmem:[%s979_s15 + $0x30] sm:$0xff]  ;;  %v289_v11 = vld [vmem:[%s979_s15 + $0x38] sm:$0xff]  ;;  %v290_v12 = vld [vmem:[%s979_s15 + $0x40] sm:$0xff] }
  0x11   : > { %v291_v16 = vld [vmem:[%s979_s15 + $0x48] sm:$0xff]  ;;  %522 = vmatpush.msra.mxu1 %v513_v15  ;;  %v510_v19 = vld [vmem:[%s1273_s3 + $0x50] sm:$0xff]  ;;  %v508_v22 = vld [vmem:[%s1273_s3 + $0x40] sm:$0xff] }
  0x12   : > { %402 = vmatpush.msra.mxu0 %v306_v3  ;;  %859 = vmatpush.msra.mxu3 %v306_v3  ;;  %v509_v20 = vld [vmem:[%s1273_s3 + $0x48] sm:$0xff]  ;;  %v292_v21 = vld [vmem:[%s979_s15 + $0x50] sm:$0xff]  ;;  %v507_v23 = vld [vmem:[%s1273_s3 + $0x38] sm:$0xff] }
  0x13   : > { %830 = vmatmul.msk.f32.vlgmr.msra.gmra.mxu0 %vm314_vm0, %v282_v4  ;;  %523 = vmatpush.msra.mxu1 %v512_v17  ;;  %v506_v24 = vld [vmem:[%s1273_s3 + $0x30] sm:$0xff]  ;;  %v505_v25 = vld [vmem:[%s1273_s3 + $0x28] sm:$0xff]  ;;  %v293_v26 = vld [vmem:[%s979_s15 + $0x58] sm:$0xff] }
  0x14   : > { %860 = vmatpush.msrb.mxu3 %v515_v13  ;;  %v504_v27 = vld [vmem:[%s1273_s3 + $0x20] sm:$0xff]  ;;  %v503_v28 = vld [vmem:[%s1273_s3 + $0x18] sm:$0xff]  ;;  %v502_v29 = vld [vmem:[%s1273_s3 + $0x10] sm:$0xff] }
  0x15   : > { %524 = vmatpush.msra.mxu1 %v511_v18  ;;  %v294_v30 = vld [vmem:[%s979_s15 + $0x60] sm:$0xff]  ;;  %v501_v31 = vld [vmem:[%s1273_s3 + $0x8] sm:$0xff]  ;;  %v296_v34 = vld [vmem:[%s979_s15 + $0x70] sm:$0xff] }
  0x16   : > { %861 = vmatpush.msrb.mxu3 %v514_v14  ;;  %v500_v32 = vld [vmem:[%s1273_s3] sm:$0xff]  ;;  %v295_v33 = vld [vmem:[%s979_s15 + $0x68] sm:$0xff]  ;;  %v297_v35 = vld [vmem:[%s979_s15 + $0x78] sm:$0xff] }
  0x17   : > { %525 = vmatpush.msra.mxu1 %v510_v19  ;;  %v302_v36 = vld [vmem:[%s979_s15 + $0xa0] sm:$0xff]  ;;  %v303_v42 = vld [vmem:[%s979_s15 + $0xa8] sm:$0xff]  ;;  %v304_v47 = vld [vmem:[%s979_s15 + $0xb0] sm:$0xff] }
  0x18   : > { %862 = vmatpush.msrb.mxu3 %v513_v15  ;;  %v1066_v37 = vld [vmem:[%s1272_s2] ss:$0 sm:$0xff]  ;;  %v299_v44 = vld [vmem:[%s979_s15 + $0x88] sm:$0xff]  ;;  %v300_v49 = vld [vmem:[%s979_s15 + $0x90] sm:$0xff] }
  0x19   : > { %526 = vmatpush.msra.mxu1 %v509_v20  ;;  %850 = vmatmul.msk.f32.vlgmr.msra.gmra.mxu3 %vm314_vm0, %v302_v36  ;;  %v298_v39 = vld [vmem:[%s979_s15 + $0x80] sm:$0xff]  ;;  %v305_v52 = vld [vmem:[%s979_s15 + $0xb8] sm:$0xff]  ;;  %v646_v13 = vld [vmem:[%s1275_s5 + $0x68] sm:$0xff] }
  0x1a   : > { %863 = vmatpush.msrb.mxu3 %v512_v17  ;;  %v301_v54 = vld [vmem:[%s979_s15 + $0x98] sm:$0xff]  ;;  %v645_v14 = vld [vmem:[%s1275_s5 + $0x60] sm:$0xff] }
  0x1b   : > { %831 = vmatmul.msk.f32.gmra.mxu0 %vm314_vm0, %v283_v5  ;;  %527 = vmatpush.msra.mxu1 %v508_v22  ;;  %v644_v15 = vld [vmem:[%s1275_s5 + $0x58] sm:$0xff] }
  0x1c   : > { %864 = vmatpush.msrb.mxu3 %v511_v18  ;;  %v643_v18 = vld [vmem:[%s1275_s5 + $0x50] sm:$0xff] }
  0x1d   : > { %528 = vmatpush.msra.mxu1 %v507_v23 }
  0x1e   : > { %865 = vmatpush.msrb.mxu3 %v510_v19 }
  0x1f   : > { %529 = vmatpush.msra.mxu1 %v506_v24 }
  0x20   : > { %866 = vmatpush.msrb.mxu3 %v509_v20  ;;  %v642_v20 = vld [vmem:[%s1275_s5 + $0x48] sm:$0xff] }
  0x21   : > { %530 = vmatpush.msra.mxu1 %v505_v25  ;;  %851 = vmatmul.msk.f32.gmra.mxu3 %vm314_vm0, %v303_v42 }
  0x22   : > { %867 = vmatpush.msrb.mxu3 %v508_v22  ;;  %v640_v22 = vld [vmem:[%s1275_s5 + $0x38] sm:$0xff] }
  0x23   : > { %832 = vmatmul.msk.f32.gmra.mxu0 %vm314_vm0, %v284_v6  ;;  %531 = vmatpush.msra.mxu1 %v504_v27 }
  0x24   : > { %868 = vmatpush.msrb.mxu3 %v507_v23 }
  0x25   : > { %532 = vmatpush.msra.mxu1 %v503_v28 }
  0x26   : > { %869 = vmatpush.msrb.mxu3 %v506_v24 }
  0x27   : > { %533 = vmatpush.msra.mxu1 %v502_v29 }
  0x28   : > { %870 = vmatpush.msrb.mxu3 %v505_v25  ;;  %v639_v25 = vld [vmem:[%s1275_s5 + $0x30] sm:$0xff] }
  0x29   : > { %534 = vmatpush.msra.mxu1 %v501_v31  ;;  %852 = vmatmul.msk.f32.gmra.mxu3 %vm314_vm0, %v304_v47 }
  0x2a   : > { %871 = vmatpush.msrb.mxu3 %v504_v27  ;;  %v638_v27 = vld [vmem:[%s1275_s5 + $0x28] sm:$0xff] }
  0x2b   : > { %833 = vmatmul.msk.f32.gmra.mxu0 %vm314_vm0, %v285_v7  ;;  %535 = vmatpush.msra.mxu1 %v500_v32 }
  0x2c   : > { %872 = vmatpush.msrb.mxu3 %v503_v28  ;;  %v637_v28 = vld [vmem:[%s1275_s5 + $0x20] sm:$0xff] }
  0x2e   : > { %873 = vmatpush.msrb.mxu3 %v502_v29  ;;  %v636_v29 = vld [vmem:[%s1275_s5 + $0x18] sm:$0xff] }
  0x30   : > { %874 = vmatpush.msrb.mxu3 %v501_v31 }
  0x31   : > { %853 = vmatmul.msk.f32.gmra.mxu3 %vm314_vm0, %v305_v52 }
  0x32   : > { %875 = vmatpush.msrb.mxu3 %v500_v32  ;;  %v635_v32 = vld [vmem:[%s1275_s5 + $0x10] sm:$0xff] }
  0x33   : > { %834 = vmatmul.msk.f32.gmra.mxu0 %vm314_vm0, %v286_v8  ;;  %v648_v8 = vld [vmem:[%s1275_s5 + $0x78] sm:$0xff] }
  0x34   : > { %653 = vmatpush.msra.mxu2 %v648_v8  ;;  %876 = vmatpush.msra.mxu3 %v648_v8 }
  0x3b   : > { %835 = vmatmul.msk.f32.gmra.mxu0 %vm314_vm0, %v287_v9 }
  0x43   : > { %836 = vmatmul.msk.f32.gmra.mxu0 %vm314_vm0, %v288_v10 }
  0x4b   : > { %837 = vmatmul.msk.f32.gmra.mxu0 %vm314_vm0, %v289_v11  ;;  %v647_v11 = vld [vmem:[%s1275_s5 + $0x70] sm:$0xff] }
  0x4c   : > { %654 = vmatpush.msra.mxu2 %v647_v11  ;;  %877 = vmatpush.msra.mxu3 %v647_v11 }
  0x4e   : > { %655 = vmatpush.msra.mxu2 %v646_v13  ;;  %878 = vmatpush.msra.mxu3 %v646_v13 }
  0x50   : > { %656 = vmatpush.msra.mxu2 %v645_v14  ;;  %879 = vmatpush.msra.mxu3 %v645_v14 }
  0x52   : > { %657 = vmatpush.msra.mxu2 %v644_v15  ;;  %880 = vmatpush.msra.mxu3 %v644_v15 }
  0x53   : > { %838 = vmatmul.msk.f32.gmra.mxu0 %vm314_vm0, %v290_v12 }
  0x54   : > { %658 = vmatpush.msra.mxu2 %v643_v18  ;;  %881 = vmatpush.msra.mxu3 %v643_v18 }
  0x56   : > { %659 = vmatpush.msra.mxu2 %v642_v20  ;;  %882 = vmatpush.msra.mxu3 %v642_v20 }
  0x5b   : > { %839 = vmatmul.msk.f32.gmra.mxu0 %vm314_vm0, %v291_v16 }
  0x63   : > { %840 = vmatmul.msk.f32.gmra.mxu0 %vm314_vm0, %v292_v21  ;;  %v641_v21 = vld [vmem:[%s1275_s5 + $0x40] sm:$0xff] }
  0x64   : > { %660 = vmatpush.msra.mxu2 %v641_v21  ;;  %883 = vmatpush.msra.mxu3 %v641_v21 }
  0x66   : > { %661 = vmatpush.msra.mxu2 %v640_v22  ;;  %884 = vmatpush.msra.mxu3 %v640_v22 }
  0x68   : > { %662 = vmatpush.msra.mxu2 %v639_v25  ;;  %885 = vmatpush.msra.mxu3 %v639_v25 }
  0x6a   : > { %663 = vmatpush.msra.mxu2 %v638_v27  ;;  %886 = vmatpush.msra.mxu3 %v638_v27 }
  0x6b   : > { %841 = vmatmul.msk.f32.gmra.mxu0 %vm314_vm0, %v293_v26 }
  0x6c   : > { %664 = vmatpush.msra.mxu2 %v637_v28  ;;  %887 = vmatpush.msra.mxu3 %v637_v28 }
  0x6e   : > { %665 = vmatpush.msra.mxu2 %v636_v29  ;;  %888 = vmatpush.msra.mxu3 %v636_v29 }
  0x70   : > { %666 = vmatpush.msra.mxu2 %v635_v32  ;;  %889 = vmatpush.msra.mxu3 %v635_v32 }
  0x73   : > { %842 = vmatmul.msk.f32.gmra.mxu0 %vm314_vm0, %v294_v30 }
  0x7b   : > { %843 = vmatmul.msk.f32.gmra.mxu0 %vm314_vm0, %v295_v33 }
  0x83   : > { %844 = vmatmul.msk.f32.gmra.mxu0 %vm314_vm0, %v296_v34  ;;  %v634_v34 = vld [vmem:[%s1275_s5 + $0x8] sm:$0xff] }
  0x84   : > { %667 = vmatpush.msra.mxu2 %v634_v34  ;;  %890 = vmatpush.msra.mxu3 %v634_v34 }
  0x8b   : > { %845 = vmatmul.msk.f32.gmra.mxu0 %vm314_vm0, %v297_v35  ;;  %v633_v35 = vld [vmem:[%s1275_s5] sm:$0xff] }
  0x8c   : > { %668 = vmatpush.msra.mxu2 %v633_v35  ;;  %891 = vmatpush.msra.mxu3 %v633_v35 }
  0x90   : > { %v404_v38 = vpop.f32.mrf.mxu0 }
  0x91   : > { %v405_v40 = vadd.f32 %v1066_v37, %v404_v38 }
  0x93   : > { %v476_v41 = vmax.f32 %v405_v40, 0.0  ;;  %846 = vmatmul.msk.f32.gmra.mxu0 %vm314_vm0, %v298_v39 }
  0x95   : > { %536 = vmatmul.f32.vlgmr.msra.gmra.mxu1 %v476_v41 }
  0x98   : > { %v407_v43 = vpop.f32.mrf.mxu0 }
  0x99   : > { %v408_v45 = vadd.f32 %v1066_v37, %v407_v43 }
  0x9b   : > { %v477_v46 = vmax.f32 %v408_v45, 0.0  ;;  %847 = vmatmul.msk.f32.gmra.mxu0 %vm314_vm0, %v299_v44 }
  0x9d   : > { %539 = vmatmul.f32.gmra.mxu1 %v477_v46  ;;  %v1149_v46 = vld [vmem:[%s1274_s4] ss:$0 sm:$0xff] }
  0xa0   : > { %v410_v48 = vpop.f32.mrf.mxu0 }
  0xa1   : > { %v411_v50 = vadd.f32 %v1066_v37, %v410_v48 }
  0xa3   : > { %v478_v51 = vmax.f32 %v411_v50, 0.0  ;;  %848 = vmatmul.msk.f32.gmra.mxu0 %vm314_vm0, %v300_v49 }
  0xa5   : > { %542 = vmatmul.f32.gmra.mxu1 %v478_v51 }
  0xa8   : > { %v413_v53 = vpop.f32.mrf.mxu0 }
  0xa9   : > { %v414_v55 = vadd.f32 %v1066_v37, %v413_v53 }
  0xab   : > { %v479_v56 = vmax.f32 %v414_v55, 0.0  ;;  %849 = vmatmul.msk.f32.gmra.mxu0 %vm314_vm0, %v301_v54 }
  0xad   : > { %545 = vmatmul.f32.gmra.mxu1 %v479_v56 }
  0xb0   : > { %v416_v57 = vpop.f32.mrf.mxu0 }
  0xb1   : > { %v417_v58 = vadd.f32 %v1066_v37, %v416_v57 }
  0xb3   : > { %v480_v59 = vmax.f32 %v417_v58, 0.0 }
  0xb5   : > { %548 = vmatmul.f32.gmra.mxu1 %v480_v59 }
  0xb8   : > { %v419_v60 = vpop.f32.mrf.mxu0 }
  0xb9   : > { %v420_v61 = vadd.f32 %v1066_v37, %v419_v60 }
  0xbb   : > { %v481_v62 = vmax.f32 %v420_v61, 0.0 }
  0xbd   : > { %551 = vmatmul.f32.gmra.mxu1 %v481_v62 }
  0xc0   : > { %v422_v63 = vpop.f32.mrf.mxu0 }
  0xc1   : > { %v423_v0 = vadd.f32 %v1066_v37, %v422_v63 }
  0xc3   : > { %v482_v1 = vmax.f32 %v423_v0, 0.0  ;;  %v464_v0 = vpop.f32.mrf.mxu3 }
  0xc4   : > { %v465_v8 = vadd.f32 %v1066_v37, %v464_v0 }
  0xc5   : > { %554 = vmatmul.f32.gmra.mxu1 %v482_v1 }
  0xc8   : > { %v425_v2 = vpop.f32.mrf.mxu0 }
  0xc9   : > { %v426_v3 = vadd.f32 %v1066_v37, %v425_v2 }
  0xcb   : > { %v483_v4 = vmax.f32 %v426_v3, 0.0 }
  0xcd   : > { %557 = vmatmul.f32.gmra.mxu1 %v483_v4 }
  0xd0   : > { %v428_v5 = vpop.f32.mrf.mxu0 }
  0xd1   : > { %v429_v6 = vadd.f32 %v1066_v37, %v428_v5 }
  0xd3   : > { %v484_v7 = vmax.f32 %v429_v6, 0.0 }
  0xd5   : > { %560 = vmatmul.f32.gmra.mxu1 %v484_v7 }
  0xd8   : > { %v431_v9 = vpop.f32.mrf.mxu0 }
  0xd9   : > { %v432_v10 = vadd.f32 %v1066_v37, %v431_v9  ;;  %v467_v9 = vpop.f32.mrf.mxu3 }
  0xda   : > { %v468_v14 = vadd.f32 %v1066_v37, %v467_v9 }
  0xdb   : > { %v485_v12 = vmax.f32 %v432_v10, 0.0  ;;  %v496_v10 = vmax.f32 %v465_v8, 0.0 }
  0xdd   : > { %563 = vmatmul.f32.gmra.mxu1 %v485_v12 }
  0xe0   : > { %v434_v16 = vpop.f32.mrf.mxu0 }
  0xe1   : > { %v435_v17 = vadd.f32 %v1066_v37, %v434_v16  ;;  %v470_v15 = vpop.f32.mrf.mxu3  ;;  %v497_v16 = vmax.f32 %v468_v14, 0.0 }
  0xe2   : > { %v471_v20 = vadd.f32 %v1066_v37, %v470_v15 }
  0xe3   : > { %v486_v19 = vmax.f32 %v435_v17, 0.0 }
  0xe4   : > { %v498_v21 = vmax.f32 %v471_v20, 0.0 }
  0xe5   : > { %566 = vmatmul.f32.gmra.mxu1 %v486_v19 }
  0xe8   : > { %v437_v23 = vpop.f32.mrf.mxu0 }
  0xe9   : > { %v438_v24 = vadd.f32 %v1066_v37, %v437_v23  ;;  %v473_v23 = vpop.f32.mrf.mxu3 }
  0xeb   : > { %v487_v26 = vmax.f32 %v438_v24, 0.0 }
  0xed   : > { %569 = vmatmul.f32.gmra.mxu1 %v487_v26  ;;  %v474_v26 = vadd.f32 %v1066_v37, %v473_v23 }
  0xef   : > { %v499_v27 = vmax.f32 %v474_v26, 0.0 }
  0xf0   : > { %v440_v30 = vpop.f32.mrf.mxu0 }
  0xf1   : > { %v441_v31 = vadd.f32 %v1066_v37, %v440_v30 }
  0xf3   : > { %v488_v33 = vmax.f32 %v441_v31, 0.0 }
  0xf5   : > { %572 = vmatmul.f32.gmra.mxu1 %v488_v33 }
  0xf8   : > { %v443_v36 = vpop.f32.mrf.mxu0 }
  0xf9   : > { %v444_v38 = vadd.f32 %v1066_v37, %v443_v36 }
  0xfb   : > { %v489_v39 = vmax.f32 %v444_v38, 0.0 }
  0xfd   : > { %575 = vmatmul.f32.gmra.mxu1 %v489_v39 }
 0x100   : > { %v446_v40 = vpop.f32.mrf.mxu0 }
 0x101   : > { %v447_v41 = vadd.f32 %v1066_v37, %v446_v40 }
 0x103   : > { %v490_v42 = vmax.f32 %v447_v41, 0.0 }
 0x105   : > { %578 = vmatmul.f32.gmra.mxu1 %v490_v42 }
 0x108   : > { %v449_v43 = vpop.f32.mrf.mxu0 }
 0x109   : > { %v450_v44 = vadd.f32 %v1066_v37, %v449_v43 }
 0x10b   : > { %v491_v45 = vmax.f32 %v450_v44, 0.0 }
 0x10d   : > { %581 = vmatmul.f32.gmra.mxu1 %v491_v45 }
 0x110   : > { %v452_v47 = vpop.f32.mrf.mxu0 }
 0x111   : > { %v453_v48 = vadd.f32 %v1066_v37, %v452_v47 }
 0x112   : > { %v537_v49 = vpop.f32.mrf.mxu1 }
 0x113   : > { %v492_v50 = vmax.f32 %v453_v48, 0.0  ;;  %v538_v51 = vadd.f32 %v1149_v46, %v537_v49 }
 0x115   : > { %v609_v52 = vmax.f32 %v538_v51, 0.0  ;;  %584 = vmatmul.f32.gmra.mxu1 %v492_v50 }
 0x117   : > { %669 = vmatmul.f32.vlgmr.msra.gmra.mxu2 %v609_v52 }
 0x118   : > { %v455_v53 = vpop.f32.mrf.mxu0 }
 0x119   : > { %v456_v54 = vadd.f32 %v1066_v37, %v455_v53 }
 0x11a   : > { %v540_v55 = vpop.f32.mrf.mxu1 }
 0x11b   : > { %v493_v56 = vmax.f32 %v456_v54, 0.0  ;;  %v541_v57 = vadd.f32 %v1149_v46, %v540_v55 }
 0x11d   : > { %v610_v58 = vmax.f32 %v541_v57, 0.0  ;;  %587 = vmatmul.f32.gmra.mxu1 %v493_v56 }
 0x11f   : > { %672 = vmatmul.f32.gmra.mxu2 %v610_v58 }
 0x120   : > { %v458_v59 = vpop.f32.mrf.mxu0 }
 0x121   : > { %v459_v60 = vadd.f32 %v1066_v37, %v458_v59  ;;  %v1179_v59 = vld [vmem:[%s1276_s6] ss:$0 sm:$0xff] }
 0x122   : > { %v543_v61 = vpop.f32.mrf.mxu1 }
 0x123   : > { %v494_v62 = vmax.f32 %v459_v60, 0.0  ;;  %v544_v63 = vadd.f32 %v1149_v46, %v543_v61 }
 0x125   : > { %v611_v1 = vmax.f32 %v544_v63, 0.0  ;;  %590 = vmatmul.f32.vlgmr.msrb.gmra.mxu3 %v494_v62 }
 0x127   : > { %675 = vmatmul.f32.gmra.mxu2 %v611_v1 }
 0x128   : > { %v461_v2 = vpop.f32.mrf.mxu0 }
 0x129   : > { %v462_v3 = vadd.f32 %v1066_v37, %v461_v2 }
 0x12a   : > { %v546_v4 = vpop.f32.mrf.mxu1 }
 0x12b   : > { %v495_v5 = vmax.f32 %v462_v3, 0.0  ;;  %v547_v6 = vadd.f32 %v1149_v46, %v546_v4 }
 0x12d   : > { %v612_v7 = vmax.f32 %v547_v6, 0.0  ;;  %593 = vmatmul.f32.gmra.mxu3 %v495_v5 }
 0x12f   : > { %678 = vmatmul.f32.gmra.mxu2 %v612_v7 }
 0x132   : > { %v549_v11 = vpop.f32.mrf.mxu1 }
 0x133   : > { %v550_v12 = vadd.f32 %v1149_v46, %v549_v11 }
 0x135   : > { %v613_v13 = vmax.f32 %v550_v12, 0.0  ;;  %596 = vmatmul.f32.gmra.mxu3 %v496_v10 }
 0x137   : > { %681 = vmatmul.f32.gmra.mxu2 %v613_v13 }
 0x13a   : > { %v552_v17 = vpop.f32.mrf.mxu1 }
 0x13b   : > { %v553_v18 = vadd.f32 %v1149_v46, %v552_v17 }
 0x13d   : > { %v614_v19 = vmax.f32 %v553_v18, 0.0  ;;  %599 = vmatmul.f32.gmra.mxu3 %v497_v16 }
 0x13f   : > { %684 = vmatmul.f32.gmra.mxu2 %v614_v19 }
 0x142   : > { %v555_v22 = vpop.f32.mrf.mxu1 }
 0x143   : > { %v556_v24 = vadd.f32 %v1149_v46, %v555_v22 }
 0x145   : > { %v615_v25 = vmax.f32 %v556_v24, 0.0  ;;  %602 = vmatmul.f32.gmra.mxu3 %v498_v21 }
 0x147   : > { %687 = vmatmul.f32.gmra.mxu2 %v615_v25 }
 0x14a   : > { %v558_v28 = vpop.f32.mrf.mxu1 }
 0x14b   : > { %v559_v29 = vadd.f32 %v1149_v46, %v558_v28 }
 0x14d   : > { %v616_v30 = vmax.f32 %v559_v29, 0.0  ;;  %605 = vmatmul.f32.gmra.mxu3 %v499_v27 }
 0x14f   : > { %690 = vmatmul.f32.gmra.mxu2 %v616_v30 }
 0x152   : > { %v561_v31 = vpop.f32.mrf.mxu1 }
 0x153   : > { %v562_v32 = vadd.f32 %v1149_v46, %v561_v31 }
 0x155   : > { %v617_v33 = vmax.f32 %v562_v32, 0.0 }
 0x157   : > { %693 = vmatmul.f32.gmra.mxu2 %v617_v33 }
 0x15a   : > { %v564_v34 = vpop.f32.mrf.mxu1 }
 0x15b   : > { %v565_v35 = vadd.f32 %v1149_v46, %v564_v34 }
 0x15d   : > { %v618_v36 = vmax.f32 %v565_v35, 0.0 }
 0x15f   : > { %696 = vmatmul.f32.gmra.mxu2 %v618_v36 }
 0x162   : > { %v567_v38 = vpop.f32.mrf.mxu1 }
 0x163   : > { %v568_v37 = vadd.f32 %v1149_v46, %v567_v38 }
 0x165   : > { %v619_v39 = vmax.f32 %v568_v37, 0.0 }
 0x167   : > { %699 = vmatmul.f32.gmra.mxu2 %v619_v39 }
 0x16a   : > { %v570_v40 = vpop.f32.mrf.mxu1 }
 0x16b   : > { %v571_v41 = vadd.f32 %v1149_v46, %v570_v40 }
 0x16d   : > { %v620_v42 = vmax.f32 %v571_v41, 0.0 }
 0x16f   : > { %702 = vmatmul.f32.gmra.mxu2 %v620_v42 }
 0x172   : > { %v573_v43 = vpop.f32.mrf.mxu1 }
 0x173   : > { %v574_v44 = vadd.f32 %v1149_v46, %v573_v43 }
 0x175   : > { %v621_v45 = vmax.f32 %v574_v44, 0.0 }
 0x177   : > { %705 = vmatmul.f32.gmra.mxu2 %v621_v45 }
 0x17a   : > { %v576_v47 = vpop.f32.mrf.mxu1 }
 0x17b   : > { %v577_v48 = vadd.f32 %v1149_v46, %v576_v47 }
 0x17d   : > { %v622_v49 = vmax.f32 %v577_v48, 0.0 }
 0x17f   : > { %708 = vmatmul.f32.gmra.mxu2 %v622_v49 }
 0x182   : > { %v579_v50 = vpop.f32.mrf.mxu1 }
 0x183   : > { %v580_v51 = vadd.f32 %v1149_v46, %v579_v50 }
 0x185   : > { %v623_v52 = vmax.f32 %v580_v51, 0.0 }
 0x187   : > { %711 = vmatmul.f32.gmra.mxu2 %v623_v52 }
 0x18a   : > { %v582_v53 = vpop.f32.mrf.mxu1 }
 0x18b   : > { %v583_v54 = vadd.f32 %v1149_v46, %v582_v53 }
 0x18d   : > { %v624_v55 = vmax.f32 %v583_v54, 0.0 }
 0x18f   : > { %714 = vmatmul.f32.gmra.mxu2 %v624_v55 }
 0x192   : > { %v585_v56 = vpop.f32.mrf.mxu1 }
 0x193   : > { %v586_v57 = vadd.f32 %v1149_v46, %v585_v56 }
 0x195   : > { %v625_v58 = vmax.f32 %v586_v57, 0.0 }
 0x197   : > { %717 = vmatmul.f32.gmra.mxu2 %v625_v58 }
 0x19a   : > { %v588_v60 = vpop.f32.mrf.mxu1  ;;  %v670_v61 = vpop.f32.mrf.mxu2 }
 0x19b   : > { %v589_v62 = vadd.f32 %v1149_v46, %v588_v60  ;;  %v671_v63 = vadd.f32 %v1179_v59, %v670_v61 }
 0x19d   : > { %v626_v0 = vmax.f32 %v589_v62, 0.0  ;;  %743 = vst.msk [vmem:[%s1186_s8] sm:$0xff] %vm742_vm1, %v671_v63 }
 0x19f   : > { %720 = vmatmul.f32.gmra.mxu2 %v626_v0 }
 0x1a2   : > { %v673_v1 = vpop.f32.mrf.mxu2 }
 0x1a3   : > { %v674_v2 = vadd.f32 %v1179_v59, %v673_v1 }
 0x1a5   : > { %744 = vst.msk [vmem:[%s1186_s8 + $0x8] sm:$0xff] %vm742_vm1, %v674_v2 }
 0x1a8   : > { %v591_v3 = vpop.f32.mrf.mxu3 }
 0x1a9   : > { %v592_v4 = vadd.f32 %v1149_v46, %v591_v3 }
 0x1aa   : > { %v676_v5 = vpop.f32.mrf.mxu2 }
 0x1ab   : > { %v627_v6 = vmax.f32 %v592_v4, 0.0  ;;  %v677_v7 = vadd.f32 %v1179_v59, %v676_v5 }
 0x1ad   : > { %745 = vst.msk [vmem:[%s1186_s8 + $0x10] sm:$0xff] %vm742_vm1, %v677_v7  ;;  %723 = vmatmul.f32.vlgmr.msra.gmra.mxu3 %v627_v6 }
 0x1b0   : > { %v594_v8 = vpop.f32.mrf.mxu3 }
 0x1b1   : > { %v595_v9 = vadd.f32 %v1149_v46, %v594_v8 }
 0x1b2   : > { %v679_v10 = vpop.f32.mrf.mxu2 }
 0x1b3   : > { %v628_v11 = vmax.f32 %v595_v9, 0.0  ;;  %v680_v12 = vadd.f32 %v1179_v59, %v679_v10 }
 0x1b5   : > { %746 = vst.msk [vmem:[%s1186_s8 + $0x18] sm:$0xff] %vm742_vm1, %v680_v12  ;;  %726 = vmatmul.f32.gmra.mxu3 %v628_v11 }
 0x1b8   : > { %v597_v13 = vpop.f32.mrf.mxu3 }
 0x1b9   : > { %v598_v14 = vadd.f32 %v1149_v46, %v597_v13 }
 0x1ba   : > { %v682_v15 = vpop.f32.mrf.mxu2 }
 0x1bb   : > { %v629_v16 = vmax.f32 %v598_v14, 0.0  ;;  %v683_v17 = vadd.f32 %v1179_v59, %v682_v15 }
 0x1bd   : > { %747 = vst.msk [vmem:[%s1186_s8 + $0x20] sm:$0xff] %vm742_vm1, %v683_v17  ;;  %729 = vmatmul.f32.gmra.mxu3 %v629_v16 }
 0x1c0   : > { %v600_v18 = vpop.f32.mrf.mxu3 }
 0x1c1   : > { %v601_v19 = vadd.f32 %v1149_v46, %v600_v18 }
 0x1c2   : > { %v685_v20 = vpop.f32.mrf.mxu2 }
 0x1c3   : > { %v630_v21 = vmax.f32 %v601_v19, 0.0  ;;  %v686_v22 = vadd.f32 %v1179_v59, %v685_v20 }
 0x1c5   : > { %748 = vst.msk [vmem:[%s1186_s8 + $0x28] sm:$0xff] %vm742_vm1, %v686_v22  ;;  %732 = vmatmul.f32.gmra.mxu3 %v630_v21 }
 0x1c8   : > { %v603_v23 = vpop.f32.mrf.mxu3 }
 0x1c9   : > { %v604_v24 = vadd.f32 %v1149_v46, %v603_v23 }
 0x1ca   : > { %v688_v25 = vpop.f32.mrf.mxu2 }
 0x1cb   : > { %v631_v26 = vmax.f32 %v604_v24, 0.0  ;;  %v689_v27 = vadd.f32 %v1179_v59, %v688_v25 }
 0x1cd   : > { %749 = vst.msk [vmem:[%s1186_s8 + $0x30] sm:$0xff] %vm742_vm1, %v689_v27  ;;  %735 = vmatmul.f32.gmra.mxu3 %v631_v26 }
 0x1d0   : > { %v606_v28 = vpop.f32.mrf.mxu3 }
 0x1d1   : > { %v607_v29 = vadd.f32 %v1149_v46, %v606_v28 }
 0x1d2   : > { %v691_v30 = vpop.f32.mrf.mxu2 }
 0x1d3   : > { %v632_v31 = vmax.f32 %v607_v29, 0.0  ;;  %v692_v32 = vadd.f32 %v1179_v59, %v691_v30 }
 0x1d5   : > { %750 = vst.msk [vmem:[%s1186_s8 + $0x38] sm:$0xff] %vm742_vm1, %v692_v32  ;;  %738 = vmatmul.f32.gmra.mxu3 %v632_v31 }
 0x1da   : > { %v694_v33 = vpop.f32.mrf.mxu2 }
 0x1db   : > { %v695_v34 = vadd.f32 %v1179_v59, %v694_v33 }
 0x1dd   : > { %751 = vst.msk [vmem:[%s1186_s8 + $0x40] sm:$0xff] %vm742_vm1, %v695_v34 }
 0x1e2   : > { %v697_v35 = vpop.f32.mrf.mxu2 }
 0x1e3   : > { %v698_v36 = vadd.f32 %v1179_v59, %v697_v35 }
 0x1e5   : > { %752 = vst.msk [vmem:[%s1186_s8 + $0x48] sm:$0xff] %vm742_vm1, %v698_v36 }
 0x1ea   : > { %v700_v46 = vpop.f32.mrf.mxu2 }
 0x1eb   : > { %v701_v38 = vadd.f32 %v1179_v59, %v700_v46 }
 0x1ed   : > { %753 = vst.msk [vmem:[%s1186_s8 + $0x50] sm:$0xff] %vm742_vm1, %v701_v38 }
 0x1f2   : > { %v703_v37 = vpop.f32.mrf.mxu2 }
 0x1f3   : > { %v704_v39 = vadd.f32 %v1179_v59, %v703_v37 }
 0x1f5   : > { %754 = vst.msk [vmem:[%s1186_s8 + $0x58] sm:$0xff] %vm742_vm1, %v704_v39 }
 0x1fa   : > { %v706_v40 = vpop.f32.mrf.mxu2 }
 0x1fb   : > { %v707_v41 = vadd.f32 %v1179_v59, %v706_v40 }
 0x1fd   : > { %755 = vst.msk [vmem:[%s1186_s8 + $0x60] sm:$0xff] %vm742_vm1, %v707_v41 }
 0x202   : > { %v709_v42 = vpop.f32.mrf.mxu2 }
 0x203   : > { %v710_v43 = vadd.f32 %v1179_v59, %v709_v42 }
 0x205   : > { %756 = vst.msk [vmem:[%s1186_s8 + $0x68] sm:$0xff] %vm742_vm1, %v710_v43 }
 0x20a   : > { %v712_v44 = vpop.f32.mrf.mxu2 }
 0x20b   : > { %v713_v45 = vadd.f32 %v1179_v59, %v712_v44 }
 0x20d   : > { %757 = vst.msk [vmem:[%s1186_s8 + $0x70] sm:$0xff] %vm742_vm1, %v713_v45 }
 0x212   : > { %v715_v47 = vpop.f32.mrf.mxu2 }
 0x213   : > { %v716_v48 = vadd.f32 %v1179_v59, %v715_v47 }
 0x215   : > { %758 = vst.msk [vmem:[%s1186_s8 + $0x78] sm:$0xff] %vm742_vm1, %v716_v48 }
 0x21a   : > { %v718_v49 = vpop.f32.mrf.mxu2 }
 0x21b   : > { %v719_v50 = vadd.f32 %v1179_v59, %v718_v49 }
 0x21d   : > { %759 = vst.msk [vmem:[%s1186_s8 + $0x80] sm:$0xff] %vm742_vm1, %v719_v50 }
 0x222   : > { %v721_v51 = vpop.f32.mrf.mxu2 }
 0x223   : > { %v722_v52 = vadd.f32 %v1179_v59, %v721_v51 }
 0x225   : > { %760 = vst.msk [vmem:[%s1186_s8 + $0x88] sm:$0xff] %vm742_vm1, %v722_v52 }
 0x230   : > { %v724_v53 = vpop.f32.mrf.mxu3 }
 0x231   : > { %v725_v54 = vadd.f32 %v1179_v59, %v724_v53 }
 0x233   : > { %761 = vst.msk [vmem:[%s1186_s8 + $0x90] sm:$0xff] %vm742_vm1, %v725_v54 }
 0x238   : > { %v727_v55 = vpop.f32.mrf.mxu3 }
 0x239   : > { %v728_v56 = vadd.f32 %v1179_v59, %v727_v55 }
 0x23b   : > { %762 = vst.msk [vmem:[%s1186_s8 + $0x98] sm:$0xff] %vm742_vm1, %v728_v56 }
 0x240   : > { %v730_v57 = vpop.f32.mrf.mxu3 }
 0x241   : > { %v731_v58 = vadd.f32 %v1179_v59, %v730_v57 }
 0x243   : > { %763 = vst.msk [vmem:[%s1186_s8 + $0xa0] sm:$0xff] %vm742_vm1, %v731_v58 }
 0x248   : > { %v733_v60 = vpop.f32.mrf.mxu3 }
 0x249   : > { %v734_v61 = vadd.f32 %v1179_v59, %v733_v60 }
 0x24b   : > { %764 = vst.msk [vmem:[%s1186_s8 + $0xa8] sm:$0xff] %vm742_vm1, %v734_v61 }
 0x250   : > { %v736_v62 = vpop.f32.mrf.mxu3 }
 0x251   : > { %v737_v63 = vadd.f32 %v1179_v59, %v736_v62 }
 0x253   : > { %765 = vst.msk [vmem:[%s1186_s8 + $0xb0] sm:$0xff] %vm742_vm1, %v737_v63 }
 0x258   : > { %v739_v0 = vpop.f32.mrf.mxu3 }
 0x259   : > { %v740_v1 = vadd.f32 %v1179_v59, %v739_v0 }
 0x25b   : > { %766 = vst.msk [vmem:[%s1186_s8 + $0xb8] sm:$0xff] %vm742_vm1, %v740_v1 }
 0x25c PF: > { %s17_s24 = sadd.s32 1, %s909_s24  }
 0x25d   : > { %p14_p4 = scmp.ge.s32.totalorder %s17_s24, 4  }
 0x25f   :  { %16 = sbr.rel (!%p14_p4) target bundleno = 1 (0x1), region = 78 }

// kernel: tpu_custom_call.1
= control target key start
LH: loop header
LB: loop body
LE: loop exit
PB: predicated region body
PF: predicated region fallthrough
CT: control target
= control target key end

     0   :  { %s951_s24 = smov 0   ;;  %s1270_s0 = inlined_call_operand.vmem [shape: f32[384,32], index: 0, kind: input, shape index: {}]   ;;  %s1271_s1 = inlined_call_operand.vmem [shape: f32[32,128], index: 1, kind: input, shape index: {}]   ;;  %s1272_s2 = inlined_call_operand.vmem [shape: f32[1,128], index: 2, kind: input, shape index: {}]   ;;  %s1273_s3 = inlined_call_operand.vmem [shape: f32[128,128], index: 3, kind: input, shape index: {}]   ;;  %s1274_s4 = inlined_call_operand.vmem [shape: f32[1,128], index: 4, kind: input, shape index: {}]   ;;  %s1275_s5 = inlined_call_operand.vmem [shape: f32[128,16], index: 5, kind: input, shape index: {}]   ;;  %s1276_s6 = inlined_call_operand.vmem [shape: f32[1,16], index: 6, kind: input, shape index: {}]   ;;  %s1277_s7 = inlined_call_operand.vmem [shape: f32[384,16], index: 7, kind: output, shape index: {}]  }
   0x1 LB: > { %s823_s25 = sadd.s32 4294967295, %s909_s24   ;;  %p827_p0 = scmp.ge.s32.totalorder %s909_s24, 1  ;;  %s909_s24 = sphi %s951_s24, %s17_s24  }
   0x2   : > { %p238_p1 = scmp.lt.s32.totalorder %s909_s24, 3 }
   0x4   : > { %p239_p2 = pnand %p827_p0, %p238_p1 }
   0x5   : > { %s270_s30 = smul.u32 (!%p239_p2), 24, %s823_s25 }
   0x6   : > { %242 = sbr.rel (%p239_p2) target bundleno = 604 (0x25c), region = 48 }
   0x7   : > { %p271_p3 = scmp.lt.s32.totalorder (!%p239_p2), %s270_s30, 47 }
   0xb   : > { %v309_v0 = vld [vmem:[%s1271_s1 + $0x18] sm:$0xff]  ;;  %v308_v1 = vld [vmem:[%s1271_s1 + $0x10] sm:$0xff]  ;;  %v307_v2 = vld [vmem:[%s1271_s1 + $0x8] sm:$0xff]  ;;  %s1279_s30 = smov (!%p271_p3, %s270_s30), 47  ;;  %vm314_vm0 = vcmask 261120   ;;  %vm742_vm1 = vcmask 130048  }
   0xc   : > { %399 = vmatpush.msra.mxu0 %v309_v0  ;;  %856 = vmatpush.msra.mxu3 %v309_v0  ;;  %v306_v3 = vld [vmem:[%s1271_s1] sm:$0xff]  ;;  %s828_s12 = sshll.u32 %s1279_s30, 3  ;;  %v515_v13 = vld [vmem:[%s1273_s3 + $0x78] sm:$0xff]  ;;  %v514_v14 = vld [vmem:[%s1273_s3 + $0x70] sm:$0xff] }
   0xd   : > { %s979_s15 = scalar_lea.vmem %s1270_s0, %s828_s12  ;;  %520 = vmatpush.msra.mxu1 %v515_v13  ;;  %v513_v15 = vld [vmem:[%s1273_s3 + $0x68] sm:$0xff]  ;;  %v512_v17 = vld [vmem:[%s1273_s3 + $0x60] sm:$0xff]  ;;  %v511_v18 = vld [vmem:[%s1273_s3 + $0x58] sm:$0xff]  ;;  %s1186_s8 = scalar_lea.vmem %s1277_s7, %s828_s12 }
   0xe   : > { %400 = vmatpush.msra.mxu0 %v308_v1  ;;  %857 = vmatpush.msra.mxu3 %v308_v1  ;;  %v282_v4 = vld [vmem:[%s979_s15] sm:$0xff]  ;;  %v283_v5 = vld [vmem:[%s979_s15 + $0x8] sm:$0xff]  ;;  %v284_v6 = vld [vmem:[%s979_s15 + $0x10] sm:$0xff] }
   0xf   : > { %v285_v7 = vld [vmem:[%s979_s15 + $0x18] sm:$0xff]  ;;  %v286_v8 = vld [vmem:[%s979_s15 + $0x20] sm:$0xff]  ;;  %v287_v9 = vld [vmem:[%s979_s15 + $0x28] sm:$0xff]  ;;  %521 = vmatpush.msra.mxu1 %v514_v14 }
  0x10   : > { %401 = vmatpush.msra.mxu0 %v307_v2  ;;  %858 = vmatpush.msra.mxu3 %v307_v2  ;;  %v288_v10 = vld [vmem:[%s979_s15 + $0x30] sm:$0xff]  ;;  %v289_v11 = vld [vmem:[%s979_s15 + $0x38] sm:$0xff]  ;;  %v290_v12 = vld [vmem:[%s979_s15 + $0x40] sm:$0xff] }
  0x11   : > { %v291_v16 = vld [vmem:[%s979_s15 + $0x48] sm:$0xff]  ;;  %522 = vmatpush.msra.mxu1 %v513_v15  ;;  %v510_v19 = vld [vmem:[%s1273_s3 + $0x50] sm:$0xff]  ;;  %v508_v22 = vld [vmem:[%s1273_s3 + $0x40] sm:$0xff] }
  0x12   : > { %402 = vmatpush.msra.mxu0 %v306_v3  ;;  %859 = vmatpush.msra.mxu3 %v306_v3  ;;  %v509_v20 = vld [vmem:[%s1273_s3 + $0x48] sm:$0xff]  ;;  %v292_v21 = vld [vmem:[%s979_s15 + $0x50] sm:$0xff]  ;;  %v507_v23 = vld [vmem:[%s1273_s3 + $0x38] sm:$0xff] }
  0x13   : > { %830 = vmatmul.msk.f32.vlgmr.msra.gmra.mxu0 %vm314_vm0, %v282_v4  ;;  %523 = vmatpush.msra.mxu1 %v512_v17  ;;  %v506_v24 = vld [vmem:[%s1273_s3 + $0x30] sm:$0xff]  ;;  %v505_v25 = vld [vmem:[%s1273_s3 + $0x28] sm:$0xff]  ;;  %v293_v26 = vld [vmem:[%s979_s15 + $0x58] sm:$0xff] }
  0x14   : > { %860 = vmatpush.msrb.mxu3 %v515_v13  ;;  %v504_v27 = vld [vmem:[%s1273_s3 + $0x20] sm:$0xff]  ;;  %v503_v28 = vld [vmem:[%s1273_s3 + $0x18] sm:$0xff]  ;;  %v502_v29 = vld [vmem:[%s1273_s3 + $0x10] sm:$0xff] }
  0x15   : > { %524 = vmatpush.msra.mxu1 %v511_v18  ;;  %v294_v30 = vld [vmem:[%s979_s15 + $0x60] sm:$0xff]  ;;  %v501_v31 = vld [vmem:[%s1273_s3 + $0x8] sm:$0xff]  ;;  %v296_v34 = vld [vmem:[%s979_s15 + $0x70] sm:$0xff] }
  0x16   : > { %861 = vmatpush.msrb.mxu3 %v514_v14  ;;  %v500_v32 = vld [vmem:[%s1273_s3] sm:$0xff]  ;;  %v295_v33 = vld [vmem:[%s979_s15 + $0x68] sm:$0xff]  ;;  %v297_v35 = vld [vmem:[%s979_s15 + $0x78] sm:$0xff] }
  0x17   : > { %525 = vmatpush.msra.mxu1 %v510_v19  ;;  %v302_v36 = vld [vmem:[%s979_s15 + $0xa0] sm:$0xff]  ;;  %v303_v42 = vld [vmem:[%s979_s15 + $0xa8] sm:$0xff]  ;;  %v304_v47 = vld [vmem:[%s979_s15 + $0xb0] sm:$0xff] }
  0x18   : > { %862 = vmatpush.msrb.mxu3 %v513_v15  ;;  %v1066_v37 = vld [vmem:[%s1272_s2] ss:$0 sm:$0xff]  ;;  %v299_v44 = vld [vmem:[%s979_s15 + $0x88] sm:$0xff]  ;;  %v300_v49 = vld [vmem:[%s979_s15 + $0x90] sm:$0xff] }
  0x19   : > { %526 = vmatpush.msra.mxu1 %v509_v20  ;;  %850 = vmatmul.msk.f32.vlgmr.msra.gmra.mxu3 %vm314_vm0, %v302_v36  ;;  %v298_v39 = vld [vmem:[%s979_s15 + $0x80] sm:$0xff]  ;;  %v305_v52 = vld [vmem:[%s979_s15 + $0xb8] sm:$0xff]  ;;  %v646_v13 = vld [vmem:[%s1275_s5 + $0x68] sm:$0xff] }
  0x1a   : > { %863 = vmatpush.msrb.mxu3 %v512_v17  ;;  %v301_v54 = vld [vmem:[%s979_s15 + $0x98] sm:$0xff]  ;;  %v645_v14 = vld [vmem:[%s1275_s5 + $0x60] sm:$0xff] }
  0x1b   : > { %831 = vmatmul.msk.f32.gmra.mxu0 %vm314_vm0, %v283_v5  ;;  %527 = vmatpush.msra.mxu1 %v508_v22  ;;  %v644_v15 = vld [vmem:[%s1275_s5 + $0x58] sm:$0xff] }
  0x1c   : > { %864 = vmatpush.msrb.mxu3 %v511_v18  ;;  %v643_v18 = vld [vmem:[%s1275_s5 + $0x50] sm:$0xff] }
  0x1d   : > { %528 = vmatpush.msra.mxu1 %v507_v23 }
  0x1e   : > { %865 = vmatpush.msrb.mxu3 %v510_v19 }
  0x1f   : > { %529 = vmatpush.msra.mxu1 %v506_v24 }
  0x20   : > { %866 = vmatpush.msrb.mxu3 %v509_v20  ;;  %v642_v20 = vld [vmem:[%s1275_s5 + $0x48] sm:$0xff] }
  0x21   : > { %530 = vmatpush.msra.mxu1 %v505_v25  ;;  %851 = vmatmul.msk.f32.gmra.mxu3 %vm314_vm0, %v303_v42 }
  0x22   : > { %867 = vmatpush.msrb.mxu3 %v508_v22  ;;  %v640_v22 = vld [vmem:[%s1275_s5 + $0x38] sm:$0xff] }
  0x23   : > { %832 = vmatmul.msk.f32.gmra.mxu0 %vm314_vm0, %v284_v6  ;;  %531 = vmatpush.msra.mxu1 %v504_v27 }
  0x24   : > { %868 = vmatpush.msrb.mxu3 %v507_v23 }
  0x25   : > { %532 = vmatpush.msra.mxu1 %v503_v28 }
  0x26   : > { %869 = vmatpush.msrb.mxu3 %v506_v24 }
  0x27   : > { %533 = vmatpush.msra.mxu1 %v502_v29 }
  0x28   : > { %870 = vmatpush.msrb.mxu3 %v505_v25  ;;  %v639_v25 = vld [vmem:[%s1275_s5 + $0x30] sm:$0xff] }
  0x29   : > { %534 = vmatpush.msra.mxu1 %v501_v31  ;;  %852 = vmatmul.msk.f32.gmra.mxu3 %vm314_vm0, %v304_v47 }
  0x2a   : > { %871 = vmatpush.msrb.mxu3 %v504_v27  ;;  %v638_v27 = vld [vmem:[%s1275_s5 + $0x28] sm:$0xff] }
  0x2b   : > { %833 = vmatmul.msk.f32.gmra.mxu0 %vm314_vm0, %v285_v7  ;;  %535 = vmatpush.msra.mxu1 %v500_v32 }
  0x2c   : > { %872 = vmatpush.msrb.mxu3 %v503_v28  ;;  %v637_v28 = vld [vmem:[%s1275_s5 + $0x20] sm:$0xff] }
  0x2e   : > { %873 = vmatpush.msrb.mxu3 %v502_v29  ;;  %v636_v29 = vld [vmem:[%s1275_s5 + $0x18] sm:$0xff] }
  0x30   : > { %874 = vmatpush.msrb.mxu3 %v501_v31 }
  0x31   : > { %853 = vmatmul.msk.f32.gmra.mxu3 %vm314_vm0, %v305_v52 }
  0x32   : > { %875 = vmatpush.msrb.mxu3 %v500_v32  ;;  %v635_v32 = vld [vmem:[%s1275_s5 + $0x10] sm:$0xff] }
  0x33   : > { %834 = vmatmul.msk.f32.gmra.mxu0 %vm314_vm0, %v286_v8  ;;  %v648_v8 = vld [vmem:[%s1275_s5 + $0x78] sm:$0xff] }
  0x34   : > { %653 = vmatpush.msra.mxu2 %v648_v8  ;;  %876 = vmatpush.msra.mxu3 %v648_v8 }
  0x3b   : > { %835 = vmatmul.msk.f32.gmra.mxu0 %vm314_vm0, %v287_v9 }
  0x43   : > { %836 = vmatmul.msk.f32.gmra.mxu0 %vm314_vm0, %v288_v10 }
  0x4b   : > { %837 = vmatmul.msk.f32.gmra.mxu0 %vm314_vm0, %v289_v11  ;;  %v647_v11 = vld [vmem:[%s1275_s5 + $0x70] sm:$0xff] }
  0x4c   : > { %654 = vmatpush.msra.mxu2 %v647_v11  ;;  %877 = vmatpush.msra.mxu3 %v647_v11 }
  0x4e   : > { %655 = vmatpush.msra.mxu2 %v646_v13  ;;  %878 = vmatpush.msra.mxu3 %v646_v13 }
  0x50   : > { %656 = vmatpush.msra.mxu2 %v645_v14  ;;  %879 = vmatpush.msra.mxu3 %v645_v14 }
  0x52   : > { %657 = vmatpush.msra.mxu2 %v644_v15  ;;  %880 = vmatpush.msra.mxu3 %v644_v15 }
  0x53   : > { %838 = vmatmul.msk.f32.gmra.mxu0 %vm314_vm0, %v290_v12 }
  0x54   : > { %658 = vmatpush.msra.mxu2 %v643_v18  ;;  %881 = vmatpush.msra.mxu3 %v643_v18 }
  0x56   : > { %659 = vmatpush.msra.mxu2 %v642_v20  ;;  %882 = vmatpush.msra.mxu3 %v642_v20 }
  0x5b   : > { %839 = vmatmul.msk.f32.gmra.mxu0 %vm314_vm0, %v291_v16 }
  0x63   : > { %840 = vmatmul.msk.f32.gmra.mxu0 %vm314_vm0, %v292_v21  ;;  %v641_v21 = vld [vmem:[%s1275_s5 + $0x40] sm:$0xff] }
  0x64   : > { %660 = vmatpush.msra.mxu2 %v641_v21  ;;  %883 = vmatpush.msra.mxu3 %v641_v21 }
  0x66   : > { %661 = vmatpush.msra.mxu2 %v640_v22  ;;  %884 = vmatpush.msra.mxu3 %v640_v22 }
  0x68   : > { %662 = vmatpush.msra.mxu2 %v639_v25  ;;  %885 = vmatpush.msra.mxu3 %v639_v25 }
  0x6a   : > { %663 = vmatpush.msra.mxu2 %v638_v27  ;;  %886 = vmatpush.msra.mxu3 %v638_v27 }
  0x6b   : > { %841 = vmatmul.msk.f32.gmra.mxu0 %vm314_vm0, %v293_v26 }
  0x6c   : > { %664 = vmatpush.msra.mxu2 %v637_v28  ;;  %887 = vmatpush.msra.mxu3 %v637_v28 }
  0x6e   : > { %665 = vmatpush.msra.mxu2 %v636_v29  ;;  %888 = vmatpush.msra.mxu3 %v636_v29 }
  0x70   : > { %666 = vmatpush.msra.mxu2 %v635_v32  ;;  %889 = vmatpush.msra.mxu3 %v635_v32 }
  0x73   : > { %842 = vmatmul.msk.f32.gmra.mxu0 %vm314_vm0, %v294_v30 }
  0x7b   : > { %843 = vmatmul.msk.f32.gmra.mxu0 %vm314_vm0, %v295_v33 }
  0x83   : > { %844 = vmatmul.msk.f32.gmra.mxu0 %vm314_vm0, %v296_v34  ;;  %v634_v34 = vld [vmem:[%s1275_s5 + $0x8] sm:$0xff] }
  0x84   : > { %667 = vmatpush.msra.mxu2 %v634_v34  ;;  %890 = vmatpush.msra.mxu3 %v634_v34 }
  0x8b   : > { %845 = vmatmul.msk.f32.gmra.mxu0 %vm314_vm0, %v297_v35  ;;  %v633_v35 = vld [vmem:[%s1275_s5] sm:$0xff] }
  0x8c   : > { %668 = vmatpush.msra.mxu2 %v633_v35  ;;  %891 = vmatpush.msra.mxu3 %v633_v35 }
  0x90   : > { %v404_v38 = vpop.f32.mrf.mxu0 }
  0x91   : > { %v405_v40 = vadd.f32 %v1066_v37, %v404_v38 }
  0x93   : > { %v476_v41 = vmax.f32 %v405_v40, 0.0  ;;  %846 = vmatmul.msk.f32.gmra.mxu0 %vm314_vm0, %v298_v39 }
  0x95   : > { %536 = vmatmul.f32.vlgmr.msra.gmra.mxu1 %v476_v41 }
  0x98   : > { %v407_v43 = vpop.f32.mrf.mxu0 }
  0x99   : > { %v408_v45 = vadd.f32 %v1066_v37, %v407_v43 }
  0x9b   : > { %v477_v46 = vmax.f32 %v408_v45, 0.0  ;;  %847 = vmatmul.msk.f32.gmra.mxu0 %vm314_vm0, %v299_v44 }
  0x9d   : > { %539 = vmatmul.f32.gmra.mxu1 %v477_v46  ;;  %v1149_v46 = vld [vmem:[%s1274_s4] ss:$0 sm:$0xff] }
  0xa0   : > { %v410_v48 = vpop.f32.mrf.mxu0 }
  0xa1   : > { %v411_v50 = vadd.f32 %v1066_v37, %v410_v48 }
  0xa3   : > { %v478_v51 = vmax.f32 %v411_v50, 0.0  ;;  %848 = vmatmul.msk.f32.gmra.mxu0 %vm314_vm0, %v300_v49 }
  0xa5   : > { %542 = vmatmul.f32.gmra.mxu1 %v478_v51 }
  0xa8   : > { %v413_v53 = vpop.f32.mrf.mxu0 }
  0xa9   : > { %v414_v55 = vadd.f32 %v1066_v37, %v413_v53 }
  0xab   : > { %v479_v56 = vmax.f32 %v414_v55, 0.0  ;;  %849 = vmatmul.msk.f32.gmra.mxu0 %vm314_vm0, %v301_v54 }
  0xad   : > { %545 = vmatmul.f32.gmra.mxu1 %v479_v56 }
  0xb0   : > { %v416_v57 = vpop.f32.mrf.mxu0 }
  0xb1   : > { %v417_v58 = vadd.f32 %v1066_v37, %v416_v57 }
  0xb3   : > { %v480_v59 = vmax.f32 %v417_v58, 0.0 }
  0xb5   : > { %548 = vmatmul.f32.gmra.mxu1 %v480_v59 }
  0xb8   : > { %v419_v60 = vpop.f32.mrf.mxu0 }
  0xb9   : > { %v420_v61 = vadd.f32 %v1066_v37, %v419_v60 }
  0xbb   : > { %v481_v62 = vmax.f32 %v420_v61, 0.0 }
  0xbd   : > { %551 = vmatmul.f32.gmra.mxu1 %v481_v62 }
  0xc0   : > { %v422_v63 = vpop.f32.mrf.mxu0 }
  0xc1   : > { %v423_v0 = vadd.f32 %v1066_v37, %v422_v63 }
  0xc3   : > { %v482_v1 = vmax.f32 %v423_v0, 0.0  ;;  %v464_v0 = vpop.f32.mrf.mxu3 }
  0xc4   : > { %v465_v8 = vadd.f32 %v1066_v37, %v464_v0 }
  0xc5   : > { %554 = vmatmul.f32.gmra.mxu1 %v482_v1 }
  0xc8   : > { %v425_v2 = vpop.f32.mrf.mxu0 }
  0xc9   : > { %v426_v3 = vadd.f32 %v1066_v37, %v425_v2 }
  0xcb   : > { %v483_v4 = vmax.f32 %v426_v3, 0.0 }
  0xcd   : > { %557 = vmatmul.f32.gmra.mxu1 %v483_v4 }
  0xd0   : > { %v428_v5 = vpop.f32.mrf.mxu0 }
  0xd1   : > { %v429_v6 = vadd.f32 %v1066_v37, %v428_v5 }
  0xd3   : > { %v484_v7 = vmax.f32 %v429_v6, 0.0 }
  0xd5   : > { %560 = vmatmul.f32.gmra.mxu1 %v484_v7 }
  0xd8   : > { %v431_v9 = vpop.f32.mrf.mxu0 }
  0xd9   : > { %v432_v10 = vadd.f32 %v1066_v37, %v431_v9  ;;  %v467_v9 = vpop.f32.mrf.mxu3 }
  0xda   : > { %v468_v14 = vadd.f32 %v1066_v37, %v467_v9 }
  0xdb   : > { %v485_v12 = vmax.f32 %v432_v10, 0.0  ;;  %v496_v10 = vmax.f32 %v465_v8, 0.0 }
  0xdd   : > { %563 = vmatmul.f32.gmra.mxu1 %v485_v12 }
  0xe0   : > { %v434_v16 = vpop.f32.mrf.mxu0 }
  0xe1   : > { %v435_v17 = vadd.f32 %v1066_v37, %v434_v16  ;;  %v470_v15 = vpop.f32.mrf.mxu3  ;;  %v497_v16 = vmax.f32 %v468_v14, 0.0 }
  0xe2   : > { %v471_v20 = vadd.f32 %v1066_v37, %v470_v15 }
  0xe3   : > { %v486_v19 = vmax.f32 %v435_v17, 0.0 }
  0xe4   : > { %v498_v21 = vmax.f32 %v471_v20, 0.0 }
  0xe5   : > { %566 = vmatmul.f32.gmra.mxu1 %v486_v19 }
  0xe8   : > { %v437_v23 = vpop.f32.mrf.mxu0 }
  0xe9   : > { %v438_v24 = vadd.f32 %v1066_v37, %v437_v23  ;;  %v473_v23 = vpop.f32.mrf.mxu3 }
  0xeb   : > { %v487_v26 = vmax.f32 %v438_v24, 0.0 }
  0xed   : > { %569 = vmatmul.f32.gmra.mxu1 %v487_v26  ;;  %v474_v26 = vadd.f32 %v1066_v37, %v473_v23 }
  0xef   : > { %v499_v27 = vmax.f32 %v474_v26, 0.0 }
  0xf0   : > { %v440_v30 = vpop.f32.mrf.mxu0 }
  0xf1   : > { %v441_v31 = vadd.f32 %v1066_v37, %v440_v30 }
  0xf3   : > { %v488_v33 = vmax.f32 %v441_v31, 0.0 }
  0xf5   : > { %572 = vmatmul.f32.gmra.mxu1 %v488_v33 }
  0xf8   : > { %v443_v36 = vpop.f32.mrf.mxu0 }
  0xf9   : > { %v444_v38 = vadd.f32 %v1066_v37, %v443_v36 }
  0xfb   : > { %v489_v39 = vmax.f32 %v444_v38, 0.0 }
  0xfd   : > { %575 = vmatmul.f32.gmra.mxu1 %v489_v39 }
 0x100   : > { %v446_v40 = vpop.f32.mrf.mxu0 }
 0x101   : > { %v447_v41 = vadd.f32 %v1066_v37, %v446_v40 }
 0x103   : > { %v490_v42 = vmax.f32 %v447_v41, 0.0 }
 0x105   : > { %578 = vmatmul.f32.gmra.mxu1 %v490_v42 }
 0x108   : > { %v449_v43 = vpop.f32.mrf.mxu0 }
 0x109   : > { %v450_v44 = vadd.f32 %v1066_v37, %v449_v43 }
 0x10b   : > { %v491_v45 = vmax.f32 %v450_v44, 0.0 }
 0x10d   : > { %581 = vmatmul.f32.gmra.mxu1 %v491_v45 }
 0x110   : > { %v452_v47 = vpop.f32.mrf.mxu0 }
 0x111   : > { %v453_v48 = vadd.f32 %v1066_v37, %v452_v47 }
 0x112   : > { %v537_v49 = vpop.f32.mrf.mxu1 }
 0x113   : > { %v492_v50 = vmax.f32 %v453_v48, 0.0  ;;  %v538_v51 = vadd.f32 %v1149_v46, %v537_v49 }
 0x115   : > { %v609_v52 = vmax.f32 %v538_v51, 0.0  ;;  %584 = vmatmul.f32.gmra.mxu1 %v492_v50 }
 0x117   : > { %669 = vmatmul.f32.vlgmr.msra.gmra.mxu2 %v609_v52 }
 0x118   : > { %v455_v53 = vpop.f32.mrf.mxu0 }
 0x119   : > { %v456_v54 = vadd.f32 %v1066_v37, %v455_v53 }
 0x11a   : > { %v540_v55 = vpop.f32.mrf.mxu1 }
 0x11b   : > { %v493_v56 = vmax.f32 %v456_v54, 0.0  ;;  %v541_v57 = vadd.f32 %v1149_v46, %v540_v55 }
 0x11d   : > { %v610_v58 = vmax.f32 %v541_v57, 0.0  ;;  %587 = vmatmul.f32.gmra.mxu1 %v493_v56 }
 0x11f   : > { %672 = vmatmul.f32.gmra.mxu2 %v610_v58 }
 0x120   : > { %v458_v59 = vpop.f32.mrf.mxu0 }
 0x121   : > { %v459_v60 = vadd.f32 %v1066_v37, %v458_v59  ;;  %v1179_v59 = vld [vmem:[%s1276_s6] ss:$0 sm:$0xff] }
 0x122   : > { %v543_v61 = vpop.f32.mrf.mxu1 }
 0x123   : > { %v494_v62 = vmax.f32 %v459_v60, 0.0  ;;  %v544_v63 = vadd.f32 %v1149_v46, %v543_v61 }
 0x125   : > { %v611_v1 = vmax.f32 %v544_v63, 0.0  ;;  %590 = vmatmul.f32.vlgmr.msrb.gmra.mxu3 %v494_v62 }
 0x127   : > { %675 = vmatmul.f32.gmra.mxu2 %v611_v1 }
 0x128   : > { %v461_v2 = vpop.f32.mrf.mxu0 }
 0x129   : > { %v462_v3 = vadd.f32 %v1066_v37, %v461_v2 }
 0x12a   : > { %v546_v4 = vpop.f32.mrf.mxu1 }
 0x12b   : > { %v495_v5 = vmax.f32 %v462_v3, 0.0  ;;  %v547_v6 = vadd.f32 %v1149_v46, %v546_v4 }
 0x12d   : > { %v612_v7 = vmax.f32 %v547_v6, 0.0  ;;  %593 = vmatmul.f32.gmra.mxu3 %v495_v5 }
 0x12f   : > { %678 = vmatmul.f32.gmra.mxu2 %v612_v7 }
 0x132   : > { %v549_v11 = vpop.f32.mrf.mxu1 }
 0x133   : > { %v550_v12 = vadd.f32 %v1149_v46, %v549_v11 }
 0x135   : > { %v613_v13 = vmax.f32 %v550_v12, 0.0  ;;  %596 = vmatmul.f32.gmra.mxu3 %v496_v10 }
 0x137   : > { %681 = vmatmul.f32.gmra.mxu2 %v613_v13 }
 0x13a   : > { %v552_v17 = vpop.f32.mrf.mxu1 }
 0x13b   : > { %v553_v18 = vadd.f32 %v1149_v46, %v552_v17 }
 0x13d   : > { %v614_v19 = vmax.f32 %v553_v18, 0.0  ;;  %599 = vmatmul.f32.gmra.mxu3 %v497_v16 }
 0x13f   : > { %684 = vmatmul.f32.gmra.mxu2 %v614_v19 }
 0x142   : > { %v555_v22 = vpop.f32.mrf.mxu1 }
 0x143   : > { %v556_v24 = vadd.f32 %v1149_v46, %v555_v22 }
 0x145   : > { %v615_v25 = vmax.f32 %v556_v24, 0.0  ;;  %602 = vmatmul.f32.gmra.mxu3 %v498_v21 }
 0x147   : > { %687 = vmatmul.f32.gmra.mxu2 %v615_v25 }
 0x14a   : > { %v558_v28 = vpop.f32.mrf.mxu1 }
 0x14b   : > { %v559_v29 = vadd.f32 %v1149_v46, %v558_v28 }
 0x14d   : > { %v616_v30 = vmax.f32 %v559_v29, 0.0  ;;  %605 = vmatmul.f32.gmra.mxu3 %v499_v27 }
 0x14f   : > { %690 = vmatmul.f32.gmra.mxu2 %v616_v30 }
 0x152   : > { %v561_v31 = vpop.f32.mrf.mxu1 }
 0x153   : > { %v562_v32 = vadd.f32 %v1149_v46, %v561_v31 }
 0x155   : > { %v617_v33 = vmax.f32 %v562_v32, 0.0 }
 0x157   : > { %693 = vmatmul.f32.gmra.mxu2 %v617_v33 }
 0x15a   : > { %v564_v34 = vpop.f32.mrf.mxu1 }
 0x15b   : > { %v565_v35 = vadd.f32 %v1149_v46, %v564_v34 }
 0x15d   : > { %v618_v36 = vmax.f32 %v565_v35, 0.0 }
 0x15f   : > { %696 = vmatmul.f32.gmra.mxu2 %v618_v36 }
 0x162   : > { %v567_v38 = vpop.f32.mrf.mxu1 }
 0x163   : > { %v568_v37 = vadd.f32 %v1149_v46, %v567_v38 }
 0x165   : > { %v619_v39 = vmax.f32 %v568_v37, 0.0 }
 0x167   : > { %699 = vmatmul.f32.gmra.mxu2 %v619_v39 }
 0x16a   : > { %v570_v40 = vpop.f32.mrf.mxu1 }
 0x16b   : > { %v571_v41 = vadd.f32 %v1149_v46, %v570_v40 }
 0x16d   : > { %v620_v42 = vmax.f32 %v571_v41, 0.0 }
 0x16f   : > { %702 = vmatmul.f32.gmra.mxu2 %v620_v42 }
 0x172   : > { %v573_v43 = vpop.f32.mrf.mxu1 }
 0x173   : > { %v574_v44 = vadd.f32 %v1149_v46, %v573_v43 }
 0x175   : > { %v621_v45 = vmax.f32 %v574_v44, 0.0 }
 0x177   : > { %705 = vmatmul.f32.gmra.mxu2 %v621_v45 }
 0x17a   : > { %v576_v47 = vpop.f32.mrf.mxu1 }
 0x17b   : > { %v577_v48 = vadd.f32 %v1149_v46, %v576_v47 }
 0x17d   : > { %v622_v49 = vmax.f32 %v577_v48, 0.0 }
 0x17f   : > { %708 = vmatmul.f32.gmra.mxu2 %v622_v49 }
 0x182   : > { %v579_v50 = vpop.f32.mrf.mxu1 }
 0x183   : > { %v580_v51 = vadd.f32 %v1149_v46, %v579_v50 }
 0x185   : > { %v623_v52 = vmax.f32 %v580_v51, 0.0 }
 0x187   : > { %711 = vmatmul.f32.gmra.mxu2 %v623_v52 }
 0x18a   : > { %v582_v53 = vpop.f32.mrf.mxu1 }
 0x18b   : > { %v583_v54 = vadd.f32 %v1149_v46, %v582_v53 }
 0x18d   : > { %v624_v55 = vmax.f32 %v583_v54, 0.0 }
 0x18f   : > { %714 = vmatmul.f32.gmra.mxu2 %v624_v55 }
 0x192   : > { %v585_v56 = vpop.f32.mrf.mxu1 }
 0x193   : > { %v586_v57 = vadd.f32 %v1149_v46, %v585_v56 }
 0x195   : > { %v625_v58 = vmax.f32 %v586_v57, 0.0 }
 0x197   : > { %717 = vmatmul.f32.gmra.mxu2 %v625_v58 }
 0x19a   : > { %v588_v60 = vpop.f32.mrf.mxu1  ;;  %v670_v61 = vpop.f32.mrf.mxu2 }
 0x19b   : > { %v589_v62 = vadd.f32 %v1149_v46, %v588_v60  ;;  %v671_v63 = vadd.f32 %v1179_v59, %v670_v61 }
 0x19d   : > { %v626_v0 = vmax.f32 %v589_v62, 0.0  ;;  %743 = vst.msk [vmem:[%s1186_s8] sm:$0xff] %vm742_vm1, %v671_v63 }
 0x19f   : > { %720 = vmatmul.f32.gmra.mxu2 %v626_v0 }
 0x1a2   : > { %v673_v1 = vpop.f32.mrf.mxu2 }
 0x1a3   : > { %v674_v2 = vadd.f32 %v1179_v59, %v673_v1 }
 0x1a5   : > { %744 = vst.msk [vmem:[%s1186_s8 + $0x8] sm:$0xff] %vm742_vm1, %v674_v2 }
 0x1a8   : > { %v591_v3 = vpop.f32.mrf.mxu3 }
 0x1a9   : > { %v592_v4 = vadd.f32 %v1149_v46, %v591_v3 }
 0x1aa   : > { %v676_v5 = vpop.f32.mrf.mxu2 }
 0x1ab   : > { %v627_v6 = vmax.f32 %v592_v4, 0.0  ;;  %v677_v7 = vadd.f32 %v1179_v59, %v676_v5 }
 0x1ad   : > { %745 = vst.msk [vmem:[%s1186_s8 + $0x10] sm:$0xff] %vm742_vm1, %v677_v7  ;;  %723 = vmatmul.f32.vlgmr.msra.gmra.mxu3 %v627_v6 }
 0x1b0   : > { %v594_v8 = vpop.f32.mrf.mxu3 }
 0x1b1   : > { %v595_v9 = vadd.f32 %v1149_v46, %v594_v8 }
 0x1b2   : > { %v679_v10 = vpop.f32.mrf.mxu2 }
 0x1b3   : > { %v628_v11 = vmax.f32 %v595_v9, 0.0  ;;  %v680_v12 = vadd.f32 %v1179_v59, %v679_v10 }
 0x1b5   : > { %746 = vst.msk [vmem:[%s1186_s8 + $0x18] sm:$0xff] %vm742_vm1, %v680_v12  ;;  %726 = vmatmul.f32.gmra.mxu3 %v628_v11 }
 0x1b8   : > { %v597_v13 = vpop.f32.mrf.mxu3 }
 0x1b9   : > { %v598_v14 = vadd.f32 %v1149_v46, %v597_v13 }
 0x1ba   : > { %v682_v15 = vpop.f32.mrf.mxu2 }
 0x1bb   : > { %v629_v16 = vmax.f32 %v598_v14, 0.0  ;;  %v683_v17 = vadd.f32 %v1179_v59, %v682_v15 }
 0x1bd   : > { %747 = vst.msk [vmem:[%s1186_s8 + $0x20] sm:$0xff] %vm742_vm1, %v683_v17  ;;  %729 = vmatmul.f32.gmra.mxu3 %v629_v16 }
 0x1c0   : > { %v600_v18 = vpop.f32.mrf.mxu3 }
 0x1c1   : > { %v601_v19 = vadd.f32 %v1149_v46, %v600_v18 }
 0x1c2   : > { %v685_v20 = vpop.f32.mrf.mxu2 }
 0x1c3   : > { %v630_v21 = vmax.f32 %v601_v19, 0.0  ;;  %v686_v22 = vadd.f32 %v1179_v59, %v685_v20 }
 0x1c5   : > { %748 = vst.msk [vmem:[%s1186_s8 + $0x28] sm:$0xff] %vm742_vm1, %v686_v22  ;;  %732 = vmatmul.f32.gmra.mxu3 %v630_v21 }
 0x1c8   : > { %v603_v23 = vpop.f32.mrf.mxu3 }
 0x1c9   : > { %v604_v24 = vadd.f32 %v1149_v46, %v603_v23 }
 0x1ca   : > { %v688_v25 = vpop.f32.mrf.mxu2 }
 0x1cb   : > { %v631_v26 = vmax.f32 %v604_v24, 0.0  ;;  %v689_v27 = vadd.f32 %v1179_v59, %v688_v25 }
 0x1cd   : > { %749 = vst.msk [vmem:[%s1186_s8 + $0x30] sm:$0xff] %vm742_vm1, %v689_v27  ;;  %735 = vmatmul.f32.gmra.mxu3 %v631_v26 }
 0x1d0   : > { %v606_v28 = vpop.f32.mrf.mxu3 }
 0x1d1   : > { %v607_v29 = vadd.f32 %v1149_v46, %v606_v28 }
 0x1d2   : > { %v691_v30 = vpop.f32.mrf.mxu2 }
 0x1d3   : > { %v632_v31 = vmax.f32 %v607_v29, 0.0  ;;  %v692_v32 = vadd.f32 %v1179_v59, %v691_v30 }
 0x1d5   : > { %750 = vst.msk [vmem:[%s1186_s8 + $0x38] sm:$0xff] %vm742_vm1, %v692_v32  ;;  %738 = vmatmul.f32.gmra.mxu3 %v632_v31 }
 0x1da   : > { %v694_v33 = vpop.f32.mrf.mxu2 }
 0x1db   : > { %v695_v34 = vadd.f32 %v1179_v59, %v694_v33 }
 0x1dd   : > { %751 = vst.msk [vmem:[%s1186_s8 + $0x40] sm:$0xff] %vm742_vm1, %v695_v34 }
 0x1e2   : > { %v697_v35 = vpop.f32.mrf.mxu2 }
 0x1e3   : > { %v698_v36 = vadd.f32 %v1179_v59, %v697_v35 }
 0x1e5   : > { %752 = vst.msk [vmem:[%s1186_s8 + $0x48] sm:$0xff] %vm742_vm1, %v698_v36 }
 0x1ea   : > { %v700_v46 = vpop.f32.mrf.mxu2 }
 0x1eb   : > { %v701_v38 = vadd.f32 %v1179_v59, %v700_v46 }
 0x1ed   : > { %753 = vst.msk [vmem:[%s1186_s8 + $0x50] sm:$0xff] %vm742_vm1, %v701_v38 }
 0x1f2   : > { %v703_v37 = vpop.f32.mrf.mxu2 }
 0x1f3   : > { %v704_v39 = vadd.f32 %v1179_v59, %v703_v37 }
 0x1f5   : > { %754 = vst.msk [vmem:[%s1186_s8 + $0x58] sm:$0xff] %vm742_vm1, %v704_v39 }
 0x1fa   : > { %v706_v40 = vpop.f32.mrf.mxu2 }
 0x1fb   : > { %v707_v41 = vadd.f32 %v1179_v59, %v706_v40 }
 0x1fd   : > { %755 = vst.msk [vmem:[%s1186_s8 + $0x60] sm:$0xff] %vm742_vm1, %v707_v41 }
 0x202   : > { %v709_v42 = vpop.f32.mrf.mxu2 }
 0x203   : > { %v710_v43 = vadd.f32 %v1179_v59, %v709_v42 }
 0x205   : > { %756 = vst.msk [vmem:[%s1186_s8 + $0x68] sm:$0xff] %vm742_vm1, %v710_v43 }
 0x20a   : > { %v712_v44 = vpop.f32.mrf.mxu2 }
 0x20b   : > { %v713_v45 = vadd.f32 %v1179_v59, %v712_v44 }
 0x20d   : > { %757 = vst.msk [vmem:[%s1186_s8 + $0x70] sm:$0xff] %vm742_vm1, %v713_v45 }
 0x212   : > { %v715_v47 = vpop.f32.mrf.mxu2 }
 0x213   : > { %v716_v48 = vadd.f32 %v1179_v59, %v715_v47 }
 0x215   : > { %758 = vst.msk [vmem:[%s1186_s8 + $0x78] sm:$0xff] %vm742_vm1, %v716_v48 }
 0x21a   : > { %v718_v49 = vpop.f32.mrf.mxu2 }
 0x21b   : > { %v719_v50 = vadd.f32 %v1179_v59, %v718_v49 }
 0x21d   : > { %759 = vst.msk [vmem:[%s1186_s8 + $0x80] sm:$0xff] %vm742_vm1, %v719_v50 }
 0x222   : > { %v721_v51 = vpop.f32.mrf.mxu2 }
 0x223   : > { %v722_v52 = vadd.f32 %v1179_v59, %v721_v51 }
 0x225   : > { %760 = vst.msk [vmem:[%s1186_s8 + $0x88] sm:$0xff] %vm742_vm1, %v722_v52 }
 0x230   : > { %v724_v53 = vpop.f32.mrf.mxu3 }
 0x231   : > { %v725_v54 = vadd.f32 %v1179_v59, %v724_v53 }
 0x233   : > { %761 = vst.msk [vmem:[%s1186_s8 + $0x90] sm:$0xff] %vm742_vm1, %v725_v54 }
 0x238   : > { %v727_v55 = vpop.f32.mrf.mxu3 }
 0x239   : > { %v728_v56 = vadd.f32 %v1179_v59, %v727_v55 }
 0x23b   : > { %762 = vst.msk [vmem:[%s1186_s8 + $0x98] sm:$0xff] %vm742_vm1, %v728_v56 }
 0x240   : > { %v730_v57 = vpop.f32.mrf.mxu3 }
 0x241   : > { %v731_v58 = vadd.f32 %v1179_v59, %v730_v57 }
 0x243   : > { %763 = vst.msk [vmem:[%s1186_s8 + $0xa0] sm:$0xff] %vm742_vm1, %v731_v58 }
 0x248   : > { %v733_v60 = vpop.f32.mrf.mxu3 }
 0x249   : > { %v734_v61 = vadd.f32 %v1179_v59, %v733_v60 }
 0x24b   : > { %764 = vst.msk [vmem:[%s1186_s8 + $0xa8] sm:$0xff] %vm742_vm1, %v734_v61 }
 0x250   : > { %v736_v62 = vpop.f32.mrf.mxu3 }
 0x251   : > { %v737_v63 = vadd.f32 %v1179_v59, %v736_v62 }
 0x253   : > { %765 = vst.msk [vmem:[%s1186_s8 + $0xb0] sm:$0xff] %vm742_vm1, %v737_v63 }
 0x258   : > { %v739_v0 = vpop.f32.mrf.mxu3 }
 0x259   : > { %v740_v1 = vadd.f32 %v1179_v59, %v739_v0 }
 0x25b   : > { %766 = vst.msk [vmem:[%s1186_s8 + $0xb8] sm:$0xff] %vm742_vm1, %v740_v1 }
 0x25c PF: > { %s17_s24 = sadd.s32 1, %s909_s24  }
 0x25d   : > { %p14_p4 = scmp.ge.s32.totalorder %s17_s24, 4  }
 0x25f   :  { %16 = sbr.rel (!%p14_p4) target bundleno = 1 (0x1), region = 78 }

</bundles_post_ra>
